<compile_context>
chip_gen: v6e
topology: v6e:2x2x1
jax: 0.10.0
libtpu: 0.0.40
codegen_flags: <defaults>
</compile_context>

<pallas_src>
import math
import numpy as np
import jax
import jax.numpy as jnp
from jax import lax
from jax.experimental import pallas as pl
from jax.experimental.pallas import tpu as pltpu


# -----------------------------------------------------------------------------
# Pallas kernel: bi-LSTM recurrence + attention in one kernel invocation.
# -----------------------------------------------------------------------------
def bi_att_lstm_kernel(
    x_ref,          # [T*B, D]    time-major input, flattened over (T, B)
    wih_ref,        # [D, 8H]     [fwd | rev] input->hidden weights (transposed)
    b_ref,          # [1, 8H]     [fwd | rev] combined biases (b_ih + b_hh)
    whh_f_ref,      # [H, 4H]     forward  hidden->hidden weights (transposed)
    whh_r_ref,      # [H, 4H]     reverse  hidden->hidden weights (transposed)
    ctx_ref,        # out: [B, 2H]
    attn_ref,       # out: [B, T]
    gx_scratch,     # scratch VMEM [T*B, 8H]  precomputed input projections
    out_f_scratch,  # scratch VMEM [T, B, H]  forward hidden states
    out_b_scratch,  # scratch VMEM [T, B, H]  backward hidden states
):
    T, B, H = out_f_scratch.shape
    H4 = 4 * H

    # ---- Hoisted input projection: one large MXU matmul for BOTH directions ----
    gx_scratch[...] = (
        jnp.dot(x_ref[...], wih_ref[...], preferred_element_type=jnp.float32)
        + b_ref[...]
    )  # [T*B, 8H]; columns [0:4H] = forward gates, [4H:8H] = reverse gates

    # ---- Load recurrent weights once; they stay resident in vregs ----
    whh_f = whh_f_ref[...]
    whh_r = whh_r_ref[...]

    def gate_math(gates, c):
        # PyTorch LSTM gate order: i, f, g, o
        i = jax.nn.sigmoid(gates[:, 0 * H:1 * H])
        f = jax.nn.sigmoid(gates[:, 1 * H:2 * H])
        g = jnp.tanh(gates[:, 2 * H:3 * H])
        o = jax.nn.sigmoid(gates[:, 3 * H:4 * H])
        c_new = f * c + i * g
        h_new = o * jnp.tanh(c_new)
        return h_new, c_new

    zeros = jnp.zeros((B, H), jnp.float32)

    # ---- Fused forward + reverse recurrence, fully unrolled ----
    def body(t, carry):
        h_f, c_f, h_b, c_b = carry
        tr = T - 1 - t
        # Back-to-back MXU pushes (independent) to hide result-FIFO latency.
        hg_f = jnp.dot(h_f, whh_f, preferred_element_type=jnp.float32)
        hg_b = jnp.dot(h_b, whh_r, preferred_element_type=jnp.float32)
        gates_f = gx_scratch[pl.ds(t * B, B), 0:H4] + hg_f
        gates_b = gx_scratch[pl.ds(tr * B, B), H4:2 * H4] + hg_b
        h_f, c_f = gate_math(gates_f, c_f)
        h_b, c_b = gate_math(gates_b, c_b)
        out_f_scratch[t] = h_f
        out_b_scratch[tr] = h_b
        return (h_f, c_f, h_b, c_b)

    h_fwd, _, h_bwd, _ = lax.fori_loop(
        0, T, body, (zeros, zeros, zeros, zeros), unroll=True
    )

    # ---- Attention (no [T, B, 2H] concat; per-direction partial sums) ----
    out_f = out_f_scratch[...]  # [T, B, H]
    out_b = out_b_scratch[...]  # [T, B, H]

    # scores[t, b] = <out_f[t,b,:], h_fwd[b,:]> + <out_b[t,b,:], h_bwd[b,:]>
    scores_tb = (
        jnp.sum(out_f * h_fwd[None, :, :], axis=-1)
        + jnp.sum(out_b * h_bwd[None, :, :], axis=-1)
    )                                              # [T, B]
    scores_bt = scores_tb.T                        # [B, T]

    m = jnp.max(scores_bt, axis=1, keepdims=True)
    e = jnp.exp(scores_bt - m)
    soft = e / jnp.sum(e, axis=1, keepdims=True)   # [B, T]
    attn_ref[...] = soft

    # context halves written directly, no concat/materialization of [T,B,2H]
    soft_tb = soft.T[:, :, None]                   # [T, B, 1]
    ctx_ref[:, 0:H] = jnp.sum(soft_tb * out_f, axis=0)
    ctx_ref[:, H:2 * H] = jnp.sum(soft_tb * out_b, axis=0)


# -----------------------------------------------------------------------------
# Wrapper
# -----------------------------------------------------------------------------
def bi_att_lstm_pallas(x_btd, params):
    """x_btd: [B, T, D] (batch-first, like the PyTorch module's input)."""
    B, T, D = x_btd.shape
    H = params["whh_f"].shape[0]

    # time-major, flattened over (T, B) so the input projection is one matmul
    x_flat = jnp.transpose(x_btd, (1, 0, 2)).reshape(T * B, D)

    # Pack both directions' input->hidden weights / biases side by side.
    wih = jnp.concatenate([params["wih_f"], params["wih_r"]], axis=1)  # [D, 8H]
    b = jnp.concatenate([params["b_f"], params["b_r"]], axis=1)        # [1, 8H]

    ctx, attn = pl.pallas_call(
        bi_att_lstm_kernel,
        out_shape=(
            jax.ShapeDtypeStruct((B, 2 * H), jnp.float32),
            jax.ShapeDtypeStruct((B, T), jnp.float32),
        ),
        in_specs=[pl.BlockSpec(memory_space=pltpu.MemorySpace.VMEM)] * 5,
        out_specs=(
            pl.BlockSpec(memory_space=pltpu.MemorySpace.VMEM),
            pl.BlockSpec(memory_space=pltpu.MemorySpace.VMEM),
        ),
        scratch_shapes=[
            pltpu.VMEM((T * B, 8 * H), jnp.float32),  # precomputed input gates
            pltpu.VMEM((T, B, H), jnp.float32),       # forward hidden states
            pltpu.VMEM((T, B, H), jnp.float32),       # backward hidden states
        ],
    )(
        x_flat, wih, b, params["whh_f"], params["whh_r"],
    )
    return ctx, attn


# -----------------------------------------------------------------------------
# Deterministic parameter init (matches shapes/init style of nn.LSTM in module)
# -----------------------------------------------------------------------------
def xavier_uniform(key, shape):
    fan_out, fan_in = shape  # torch layout [out, in]
    bound = math.sqrt(6.0 / (fan_in + fan_out))
    return jax.random.uniform(key, shape, jnp.float32, -bound, bound)


def make_params(key, embed_dim, hidden):
    ks = jax.random.split(key, 12)
    H4 = 4 * hidden
    # torch layouts: weight_ih [4H, D], weight_hh [4H, H], biases [4H]
    wih_f = xavier_uniform(ks[0], (H4, embed_dim))
    whh_f = xavier_uniform(ks[1], (H4, hidden))
    bih_f = jax.random.uniform(ks[2], (H4,), jnp.float32, 0.0, 1.0)
    bhh_f = jax.random.uniform(ks[3], (H4,), jnp.float32, 0.0, 1.0)
    wih_r = xavier_uniform(ks[4], (H4, embed_dim))
    whh_r = xavier_uniform(ks[5], (H4, hidden))
    bih_r = jax.random.uniform(ks[6], (H4,), jnp.float32, 0.0, 1.0)
    bhh_r = jax.random.uniform(ks[7], (H4,), jnp.float32, 0.0, 1.0)
    return {
        "wih_f": wih_f.T, "whh_f": whh_f.T, "b_f": (bih_f + bhh_f)[None, :],
        "wih_r": wih_r.T, "whh_r": whh_r.T, "b_r": (bih_r + bhh_r)[None, :],
    }


# -----------------------------------------------------------------------------
# Pure-JAX reference (same math as torch.nn.LSTM forward + attention_net)
# -----------------------------------------------------------------------------
def reference(x_btd, params):
    B, T, D = x_btd.shape
    H = params["whh_f"].shape[0]
    x_tbd = jnp.transpose(x_btd, (1, 0, 2))

    def cell(carry, x_t, wih, whh, b):
        h, c = carry
        gates = x_t @ wih + h @ whh + b
        i = jax.nn.sigmoid(gates[:, 0 * H:1 * H])
        f = jax.nn.sigmoid(gates[:, 1 * H:2 * H])
        g = jnp.tanh(gates[:, 2 * H:3 * H])
        o = jax.nn.sigmoid(gates[:, 3 * H:4 * H])
        c = f * c + i * g
        h = o * jnp.tanh(c)
        return (h, c), h

    init = (jnp.zeros((B, H)), jnp.zeros((B, H)))
    (_h_f, _), out_f = lax.scan(
        lambda cr, xt: cell(cr, xt, params["wih_f"], params["whh_f"], params["b_f"]),
        init, x_tbd)
    (_h_b, _), out_b_rev = lax.scan(
        lambda cr, xt: cell(cr, xt, params["wih_r"], params["whh_r"], params["b_r"]),
        init, x_tbd[::-1])
    out_b = out_b_rev[::-1]
    out = jnp.concatenate([out_f, out_b], axis=-1)            # [T, B, 2H]
    out_bt = jnp.transpose(out, (1, 0, 2))                    # [B, T, 2H]
    hidden = jnp.concatenate([_h_f, _h_b], axis=-1)           # [B, 2H]
    scores = jnp.einsum("bth,bh->bt", out_bt, hidden)
    soft = jax.nn.softmax(scores, axis=1)
    ctx = jnp.einsum("bth,bt->bh", out_bt, soft)
    return ctx, soft


if __name__ == "__main__":
    B, T, D, H = 2, 8, 16, 32
    key = jax.random.PRNGKey(0)
    k_x, k_p = jax.random.split(key)
    x = jax.random.normal(k_x, (B, T, D), jnp.float32)
    params = make_params(k_p, D, H)

    ctx, attn = bi_att_lstm_pallas(x, params)
    ctx = jax.block_until_ready(ctx)
    attn = jax.block_until_ready(attn)

    ctx_ref, attn_ref = reference(x, params)
    assert ctx.shape == (B, 2 * H) and attn.shape == (B, T)
    np.testing.assert_allclose(np.asarray(ctx), np.asarray(ctx_ref), rtol=1e-4, atol=1e-4)
    np.testing.assert_allclose(np.asarray(attn), np.asarray(attn_ref), rtol=1e-4, atol=1e-4)

    print("KERNEL_OK")
</pallas_src>

<mosaic_0001>
module attributes {stable_mosaic.version = 11 : i64} {
  func.func @bi_att_lstm_kernel(%arg0: memref<16x16xf32, #tpu.memory_space<vmem>>, %arg1: memref<16x256xf32, #tpu.memory_space<vmem>>, %arg2: memref<1x256xf32, #tpu.memory_space<vmem>>, %arg3: memref<32x128xf32, #tpu.memory_space<vmem>>, %arg4: memref<32x128xf32, #tpu.memory_space<vmem>>, %arg5: memref<2x64xf32, #tpu.memory_space<vmem>>, %arg6: memref<2x8xf32, #tpu.memory_space<vmem>>, %arg7: memref<16x256xf32, #tpu.memory_space<vmem>>, %arg8: memref<8x2x32xf32, #tpu.memory_space<vmem>>, %arg9: memref<8x2x32xf32, #tpu.memory_space<vmem>>) attributes {dimension_semantics = [], scalar_prefetch = 0 : i64, scratch_operands = 3 : i64, tpu.core_type = #tpu.core_type<tc>} {
    %c0 = arith.constant 0 : index
    %c0_0 = arith.constant 0 : index
    %0 = vector.load %arg0[%c0, %c0_0] : memref<16x16xf32, #tpu.memory_space<vmem>>, vector<16x16xf32>
    %c0_1 = arith.constant 0 : index
    %c0_2 = arith.constant 0 : index
    %1 = vector.load %arg1[%c0_1, %c0_2] : memref<16x256xf32, #tpu.memory_space<vmem>>, vector<16x256xf32>
    %cst = arith.constant dense<0.000000e+00> : vector<16x256xf32>
    %2 = tpu.matmul %0, %1, %cst {dimension_numbers = #tpu.dot_dimension_numbers<[1], [0], [0], [1], [0, 0, 1, 1], [], []>} : vector<16x16xf32>, vector<16x256xf32>, vector<16x256xf32> -> vector<16x256xf32>
    %c0_3 = arith.constant 0 : index
    %c0_4 = arith.constant 0 : index
    %3 = vector.load %arg2[%c0_3, %c0_4] : memref<1x256xf32, #tpu.memory_space<vmem>>, vector<1x256xf32>
    %4 = vector.broadcast %3 : vector<1x256xf32> to vector<16x256xf32>
    %5 = arith.addf %2, %4 : vector<16x256xf32>
    %c0_5 = arith.constant 0 : index
    %c0_6 = arith.constant 0 : index
    %6 = vector.load %arg7[%c0_5, %c0_6] : memref<16x256xf32, #tpu.memory_space<vmem>>, vector<16x256xf32>
    tpu.vector_store %arg7[%c0_5, %c0_6], %5 {strides = array<i32>} : memref<16x256xf32, #tpu.memory_space<vmem>>, vector<16x256xf32>,
    %c0_7 = arith.constant 0 : index
    %c0_8 = arith.constant 0 : index
    %7 = vector.load %arg3[%c0_7, %c0_8] : memref<32x128xf32, #tpu.memory_space<vmem>>, vector<32x128xf32>
    %c0_9 = arith.constant 0 : index
    %c0_10 = arith.constant 0 : index
    %8 = vector.load %arg4[%c0_9, %c0_10] : memref<32x128xf32, #tpu.memory_space<vmem>>, vector<32x128xf32>
    %cst_11 = arith.constant 0.000000e+00 : f32
    %9 = vector.broadcast %cst_11 : f32 to vector<2x32xf32>
    %c0_i32 = arith.constant 0 : i32
    %c7_i32 = arith.constant 7 : i32
    %10 = arith.subi %c7_i32, %c0_i32 : i32
    %cst_12 = arith.constant dense<0.000000e+00> : vector<2x128xf32>
    %11 = tpu.matmul %9, %7, %cst_12 {dimension_numbers = #tpu.dot_dimension_numbers<[1], [0], [0], [1], [0, 0, 1, 1], [], []>} : vector<2x32xf32>, vector<32x128xf32>, vector<2x128xf32> -> vector<2x128xf32>
    %cst_13 = arith.constant dense<0.000000e+00> : vector<2x128xf32>
    %12 = tpu.matmul %9, %8, %cst_13 {dimension_numbers = #tpu.dot_dimension_numbers<[1], [0], [0], [1], [0, 0, 1, 1], [], []>} : vector<2x32xf32>, vector<32x128xf32>, vector<2x128xf32> -> vector<2x128xf32>
    %c2_i32 = arith.constant 2 : i32
    %13 = arith.muli %c0_i32, %c2_i32 : i32
    %14 = arith.index_cast %13 : i32 to index
    %c0_14 = arith.constant 0 : index
    %15 = vector.load %arg7[%14, %c0_14] : memref<16x256xf32, #tpu.memory_space<vmem>>, vector<2x128xf32>
    %16 = arith.addf %15, %11 : vector<2x128xf32>
    %c2_i32_15 = arith.constant 2 : i32
    %17 = arith.muli %10, %c2_i32_15 : i32
    %18 = arith.index_cast %17 : i32 to index
    %c128 = arith.constant 128 : index
    %19 = vector.load %arg7[%18, %c128] : memref<16x256xf32, #tpu.memory_space<vmem>>, vector<2x128xf32>
    %20 = arith.addf %19, %12 : vector<2x128xf32>
    %21 = vector.extract_strided_slice %16 {offsets = [0, 0], sizes = [2, 32], strides = [1, 1]} : vector<2x128xf32> to vector<2x32xf32>
    %22 = arith.negf %21 : vector<2x32xf32>
    %23 = math.exp %22 : vector<2x32xf32>
    %cst_16 = arith.constant 1.000000e+00 : f32
    %24 = vector.broadcast %cst_16 : f32 to vector<2x32xf32>
    %25 = arith.addf %24, %23 : vector<2x32xf32>
    %26 = arith.divf %24, %25 : vector<2x32xf32>
    %27 = vector.extract_strided_slice %16 {offsets = [0, 32], sizes = [2, 32], strides = [1, 1]} : vector<2x128xf32> to vector<2x32xf32>
    %28 = arith.negf %27 : vector<2x32xf32>
    %29 = math.exp %28 : vector<2x32xf32>
    %cst_17 = arith.constant 1.000000e+00 : f32
    %30 = vector.broadcast %cst_17 : f32 to vector<2x32xf32>
    %31 = arith.addf %30, %29 : vector<2x32xf32>
    %32 = arith.divf %30, %31 : vector<2x32xf32>
    %33 = vector.extract_strided_slice %16 {offsets = [0, 64], sizes = [2, 32], strides = [1, 1]} : vector<2x128xf32> to vector<2x32xf32>
    %34 = math.tanh %33 : vector<2x32xf32>
    %35 = vector.extract_strided_slice %16 {offsets = [0, 96], sizes = [2, 32], strides = [1, 1]} : vector<2x128xf32> to vector<2x32xf32>
    %36 = arith.negf %35 : vector<2x32xf32>
    %37 = math.exp %36 : vector<2x32xf32>
    %cst_18 = arith.constant 1.000000e+00 : f32
    %38 = vector.broadcast %cst_18 : f32 to vector<2x32xf32>
    %39 = arith.addf %38, %37 : vector<2x32xf32>
    %40 = arith.divf %38, %39 : vector<2x32xf32>
    %41 = arith.mulf %32, %9 : vector<2x32xf32>
    %42 = arith.mulf %26, %34 : vector<2x32xf32>
    %43 = arith.addf %41, %42 : vector<2x32xf32>
    %44 = math.tanh %43 : vector<2x32xf32>
    %45 = arith.mulf %40, %44 : vector<2x32xf32>
    %46 = vector.extract_strided_slice %20 {offsets = [0, 0], sizes = [2, 32], strides = [1, 1]} : vector<2x128xf32> to vector<2x32xf32>
    %47 = arith.negf %46 : vector<2x32xf32>
    %48 = math.exp %47 : vector<2x32xf32>
    %cst_19 = arith.constant 1.000000e+00 : f32
    %49 = vector.broadcast %cst_19 : f32 to vector<2x32xf32>
    %50 = arith.addf %49, %48 : vector<2x32xf32>
    %51 = arith.divf %49, %50 : vector<2x32xf32>
    %52 = vector.extract_strided_slice %20 {offsets = [0, 32], sizes = [2, 32], strides = [1, 1]} : vector<2x128xf32> to vector<2x32xf32>
    %53 = arith.negf %52 : vector<2x32xf32>
    %54 = math.exp %53 : vector<2x32xf32>
    %cst_20 = arith.constant 1.000000e+00 : f32
    %55 = vector.broadcast %cst_20 : f32 to vector<2x32xf32>
    %56 = arith.addf %55, %54 : vector<2x32xf32>
    %57 = arith.divf %55, %56 : vector<2x32xf32>
    %58 = vector.extract_strided_slice %20 {offsets = [0, 64], sizes = [2, 32], strides = [1, 1]} : vector<2x128xf32> to vector<2x32xf32>
    %59 = math.tanh %58 : vector<2x32xf32>
    %60 = vector.extract_strided_slice %20 {offsets = [0, 96], sizes = [2, 32], strides = [1, 1]} : vector<2x128xf32> to vector<2x32xf32>
    %61 = arith.negf %60 : vector<2x32xf32>
    %62 = math.exp %61 : vector<2x32xf32>
    %cst_21 = arith.constant 1.000000e+00 : f32
    %63 = vector.broadcast %cst_21 : f32 to vector<2x32xf32>
    %64 = arith.addf %63, %62 : vector<2x32xf32>
    %65 = arith.divf %63, %64 : vector<2x32xf32>
    %66 = arith.mulf %57, %9 : vector<2x32xf32>
    %67 = arith.mulf %51, %59 : vector<2x32xf32>
    %68 = arith.addf %66, %67 : vector<2x32xf32>
    %69 = math.tanh %68 : vector<2x32xf32>
    %70 = arith.mulf %65, %69 : vector<2x32xf32>
    %71 = arith.index_cast %c0_i32 : i32 to index
    %c0_22 = arith.constant 0 : index
    %c0_23 = arith.constant 0 : index
    %72 = vector.load %arg8[%71, %c0_22, %c0_23] : memref<8x2x32xf32, #tpu.memory_space<vmem>>, vector<1x2x32xf32>
    %73 = vector.shape_cast %72 : vector<1x2x32xf32> to vector<2x32xf32>
    %74 = vector.shape_cast %45 : vector<2x32xf32> to vector<1x2x32xf32>
    tpu.vector_store %arg8[%71, %c0_22, %c0_23], %74 {strides = array<i32>} : memref<8x2x32xf32, #tpu.memory_space<vmem>>, vector<1x2x32xf32>,
    %75 = arith.index_cast %10 : i32 to index
    %c0_24 = arith.constant 0 : index
    %c0_25 = arith.constant 0 : index
    %76 = vector.load %arg9[%75, %c0_24, %c0_25] : memref<8x2x32xf32, #tpu.memory_space<vmem>>, vector<1x2x32xf32>
    %77 = vector.shape_cast %76 : vector<1x2x32xf32> to vector<2x32xf32>
    %78 = vector.shape_cast %70 : vector<2x32xf32> to vector<1x2x32xf32>
    tpu.vector_store %arg9[%75, %c0_24, %c0_25], %78 {strides = array<i32>} : memref<8x2x32xf32, #tpu.memory_space<vmem>>, vector<1x2x32xf32>,
    %c1_i32 = arith.constant 1 : i32
    %c7_i32_26 = arith.constant 7 : i32
    %79 = arith.subi %c7_i32_26, %c1_i32 : i32
    %cst_27 = arith.constant dense<0.000000e+00> : vector<2x128xf32>
    %80 = tpu.matmul %45, %7, %cst_27 {dimension_numbers = #tpu.dot_dimension_numbers<[1], [0], [0], [1], [0, 0, 1, 1], [], []>} : vector<2x32xf32>, vector<32x128xf32>, vector<2x128xf32> -> vector<2x128xf32>
    %cst_28 = arith.constant dense<0.000000e+00> : vector<2x128xf32>
    %81 = tpu.matmul %70, %8, %cst_28 {dimension_numbers = #tpu.dot_dimension_numbers<[1], [0], [0], [1], [0, 0, 1, 1], [], []>} : vector<2x32xf32>, vector<32x128xf32>, vector<2x128xf32> -> vector<2x128xf32>
    %c2_i32_29 = arith.constant 2 : i32
    %82 = arith.muli %c1_i32, %c2_i32_29 : i32
    %83 = arith.index_cast %82 : i32 to index
    %c0_30 = arith.constant 0 : index
    %84 = vector.load %arg7[%83, %c0_30] : memref<16x256xf32, #tpu.memory_space<vmem>>, vector<2x128xf32>
    %85 = arith.addf %84, %80 : vector<2x128xf32>
    %c2_i32_31 = arith.constant 2 : i32
    %86 = arith.muli %79, %c2_i32_31 : i32
    %87 = arith.index_cast %86 : i32 to index
    %c128_32 = arith.constant 128 : index
    %88 = vector.load %arg7[%87, %c128_32] : memref<16x256xf32, #tpu.memory_space<vmem>>, vector<2x128xf32>
    %89 = arith.addf %88, %81 : vector<2x128xf32>
    %90 = vector.extract_strided_slice %85 {offsets = [0, 0], sizes = [2, 32], strides = [1, 1]} : vector<2x128xf32> to vector<2x32xf32>
    %91 = arith.negf %90 : vector<2x32xf32>
    %92 = math.exp %91 : vector<2x32xf32>
    %cst_33 = arith.constant 1.000000e+00 : f32
    %93 = vector.broadcast %cst_33 : f32 to vector<2x32xf32>
    %94 = arith.addf %93, %92 : vector<2x32xf32>
    %95 = arith.divf %93, %94 : vector<2x32xf32>
    %96 = vector.extract_strided_slice %85 {offsets = [0, 32], sizes = [2, 32], strides = [1, 1]} : vector<2x128xf32> to vector<2x32xf32>
    %97 = arith.negf %96 : vector<2x32xf32>
    %98 = math.exp %97 : vector<2x32xf32>
    %cst_34 = arith.constant 1.000000e+00 : f32
    %99 = vector.broadcast %cst_34 : f32 to vector<2x32xf32>
    %100 = arith.addf %99, %98 : vector<2x32xf32>
    %101 = arith.divf %99, %100 : vector<2x32xf32>
    %102 = vector.extract_strided_slice %85 {offsets = [0, 64], sizes = [2, 32], strides = [1, 1]} : vector<2x128xf32> to vector<2x32xf32>
    %103 = math.tanh %102 : vector<2x32xf32>
    %104 = vector.extract_strided_slice %85 {offsets = [0, 96], sizes = [2, 32], strides = [1, 1]} : vector<2x128xf32> to vector<2x32xf32>
    %105 = arith.negf %104 : vector<2x32xf32>
    %106 = math.exp %105 : vector<2x32xf32>
    %cst_35 = arith.constant 1.000000e+00 : f32
    %107 = vector.broadcast %cst_35 : f32 to vector<2x32xf32>
    %108 = arith.addf %107, %106 : vector<2x32xf32>
    %109 = arith.divf %107, %108 : vector<2x32xf32>
    %110 = arith.mulf %101, %43 : vector<2x32xf32>
    %111 = arith.mulf %95, %103 : vector<2x32xf32>
    %112 = arith.addf %110, %111 : vector<2x32xf32>
    %113 = math.tanh %112 : vector<2x32xf32>
    %114 = arith.mulf %109, %113 : vector<2x32xf32>
    %115 = vector.extract_strided_slice %89 {offsets = [0, 0], sizes = [2, 32], strides = [1, 1]} : vector<2x128xf32> to vector<2x32xf32>
    %116 = arith.negf %115 : vector<2x32xf32>
    %117 = math.exp %116 : vector<2x32xf32>
    %cst_36 = arith.constant 1.000000e+00 : f32
    %118 = vector.broadcast %cst_36 : f32 to vector<2x32xf32>
    %119 = arith.addf %118, %117 : vector<2x32xf32>
    %120 = arith.divf %118, %119 : vector<2x32xf32>
    %121 = vector.extract_strided_slice %89 {offsets = [0, 32], sizes = [2, 32], strides = [1, 1]} : vector<2x128xf32> to vector<2x32xf32>
    %122 = arith.negf %121 : vector<2x32xf32>
    %123 = math.exp %122 : vector<2x32xf32>
    %cst_37 = arith.constant 1.000000e+00 : f32
    %124 = vector.broadcast %cst_37 : f32 to vector<2x32xf32>
    %125 = arith.addf %124, %123 : vector<2x32xf32>
    %126 = arith.divf %124, %125 : vector<2x32xf32>
    %127 = vector.extract_strided_slice %89 {offsets = [0, 64], sizes = [2, 32], strides = [1, 1]} : vector<2x128xf32> to vector<2x32xf32>
    %128 = math.tanh %127 : vector<2x32xf32>
    %129 = vector.extract_strided_slice %89 {offsets = [0, 96], sizes = [2, 32], strides = [1, 1]} : vector<2x128xf32> to vector<2x32xf32>
    %130 = arith.negf %129 : vector<2x32xf32>
    %131 = math.exp %130 : vector<2x32xf32>
    %cst_38 = arith.constant 1.000000e+00 : f32
    %132 = vector.broadcast %cst_38 : f32 to vector<2x32xf32>
    %133 = arith.addf %132, %131 : vector<2x32xf32>
    %134 = arith.divf %132, %133 : vector<2x32xf32>
    %135 = arith.mulf %126, %68 : vector<2x32xf32>
    %136 = arith.mulf %120, %128 : vector<2x32xf32>
    %137 = arith.addf %135, %136 : vector<2x32xf32>
    %138 = math.tanh %137 : vector<2x32xf32>
    %139 = arith.mulf %134, %138 : vector<2x32xf32>
    %140 = arith.index_cast %c1_i32 : i32 to index
    %c0_39 = arith.constant 0 : index
    %c0_40 = arith.constant 0 : index
    %141 = vector.load %arg8[%140, %c0_39, %c0_40] : memref<8x2x32xf32, #tpu.memory_space<vmem>>, vector<1x2x32xf32>
    %142 = vector.shape_cast %141 : vector<1x2x32xf32> to vector<2x32xf32>
    %143 = vector.shape_cast %114 : vector<2x32xf32> to vector<1x2x32xf32>
    tpu.vector_store %arg8[%140, %c0_39, %c0_40], %143 {strides = array<i32>} : memref<8x2x32xf32, #tpu.memory_space<vmem>>, vector<1x2x32xf32>,
    %144 = arith.index_cast %79 : i32 to index
    %c0_41 = arith.constant 0 : index
    %c0_42 = arith.constant 0 : index
    %145 = vector.load %arg9[%144, %c0_41, %c0_42] : memref<8x2x32xf32, #tpu.memory_space<vmem>>, vector<1x2x32xf32>
    %146 = vector.shape_cast %145 : vector<1x2x32xf32> to vector<2x32xf32>
    %147 = vector.shape_cast %139 : vector<2x32xf32> to vector<1x2x32xf32>
    tpu.vector_store %arg9[%144, %c0_41, %c0_42], %147 {strides = array<i32>} : memref<8x2x32xf32, #tpu.memory_space<vmem>>, vector<1x2x32xf32>,
    %c2_i32_43 = arith.constant 2 : i32
    %c7_i32_44 = arith.constant 7 : i32
    %148 = arith.subi %c7_i32_44, %c2_i32_43 : i32
    %cst_45 = arith.constant dense<0.000000e+00> : vector<2x128xf32>
    %149 = tpu.matmul %114, %7, %cst_45 {dimension_numbers = #tpu.dot_dimension_numbers<[1], [0], [0], [1], [0, 0, 1, 1], [], []>} : vector<2x32xf32>, vector<32x128xf32>, vector<2x128xf32> -> vector<2x128xf32>
    %cst_46 = arith.constant dense<0.000000e+00> : vector<2x128xf32>
    %150 = tpu.matmul %139, %8, %cst_46 {dimension_numbers = #tpu.dot_dimension_numbers<[1], [0], [0], [1], [0, 0, 1, 1], [], []>} : vector<2x32xf32>, vector<32x128xf32>, vector<2x128xf32> -> vector<2x128xf32>
    %c2_i32_47 = arith.constant 2 : i32
    %151 = arith.muli %c2_i32_43, %c2_i32_47 : i32
    %152 = arith.index_cast %151 : i32 to index
    %c0_48 = arith.constant 0 : index
    %153 = vector.load %arg7[%152, %c0_48] : memref<16x256xf32, #tpu.memory_space<vmem>>, vector<2x128xf32>
    %154 = arith.addf %153, %149 : vector<2x128xf32>
    %c2_i32_49 = arith.constant 2 : i32
    %155 = arith.muli %148, %c2_i32_49 : i32
    %156 = arith.index_cast %155 : i32 to index
    %c128_50 = arith.constant 128 : index
    %157 = vector.load %arg7[%156, %c128_50] : memref<16x256xf32, #tpu.memory_space<vmem>>, vector<2x128xf32>
    %158 = arith.addf %157, %150 : vector<2x128xf32>
    %159 = vector.extract_strided_slice %154 {offsets = [0, 0], sizes = [2, 32], strides = [1, 1]} : vector<2x128xf32> to vector<2x32xf32>
    %160 = arith.negf %159 : vector<2x32xf32>
    %161 = math.exp %160 : vector<2x32xf32>
    %cst_51 = arith.constant 1.000000e+00 : f32
    %162 = vector.broadcast %cst_51 : f32 to vector<2x32xf32>
    %163 = arith.addf %162, %161 : vector<2x32xf32>
    %164 = arith.divf %162, %163 : vector<2x32xf32>
    %165 = vector.extract_strided_slice %154 {offsets = [0, 32], sizes = [2, 32], strides = [1, 1]} : vector<2x128xf32> to vector<2x32xf32>
    %166 = arith.negf %165 : vector<2x32xf32>
    %167 = math.exp %166 : vector<2x32xf32>
    %cst_52 = arith.constant 1.000000e+00 : f32
    %168 = vector.broadcast %cst_52 : f32 to vector<2x32xf32>
    %169 = arith.addf %168, %167 : vector<2x32xf32>
    %170 = arith.divf %168, %169 : vector<2x32xf32>
    %171 = vector.extract_strided_slice %154 {offsets = [0, 64], sizes = [2, 32], strides = [1, 1]} : vector<2x128xf32> to vector<2x32xf32>
    %172 = math.tanh %171 : vector<2x32xf32>
    %173 = vector.extract_strided_slice %154 {offsets = [0, 96], sizes = [2, 32], strides = [1, 1]} : vector<2x128xf32> to vector<2x32xf32>
    %174 = arith.negf %173 : vector<2x32xf32>
    %175 = math.exp %174 : vector<2x32xf32>
    %cst_53 = arith.constant 1.000000e+00 : f32
    %176 = vector.broadcast %cst_53 : f32 to vector<2x32xf32>
    %177 = arith.addf %176, %175 : vector<2x32xf32>
    %178 = arith.divf %176, %177 : vector<2x32xf32>
    %179 = arith.mulf %170, %112 : vector<2x32xf32>
    %180 = arith.mulf %164, %172 : vector<2x32xf32>
    %181 = arith.addf %179, %180 : vector<2x32xf32>
    %182 = math.tanh %181 : vector<2x32xf32>
    %183 = arith.mulf %178, %182 : vector<2x32xf32>
    %184 = vector.extract_strided_slice %158 {offsets = [0, 0], sizes = [2, 32], strides = [1, 1]} : vector<2x128xf32> to vector<2x32xf32>
    %185 = arith.negf %184 : vector<2x32xf32>
    %186 = math.exp %185 : vector<2x32xf32>
    %cst_54 = arith.constant 1.000000e+00 : f32
    %187 = vector.broadcast %cst_54 : f32 to vector<2x32xf32>
    %188 = arith.addf %187, %186 : vector<2x32xf32>
    %189 = arith.divf %187, %188 : vector<2x32xf32>
    %190 = vector.extract_strided_slice %158 {offsets = [0, 32], sizes = [2, 32], strides = [1, 1]} : vector<2x128xf32> to vector<2x32xf32>
    %191 = arith.negf %190 : vector<2x32xf32>
    %192 = math.exp %191 : vector<2x32xf32>
    %cst_55 = arith.constant 1.000000e+00 : f32
    %193 = vector.broadcast %cst_55 : f32 to vector<2x32xf32>
    %194 = arith.addf %193, %192 : vector<2x32xf32>
    %195 = arith.divf %193, %194 : vector<2x32xf32>
    %196 = vector.extract_strided_slice %158 {offsets = [0, 64], sizes = [2, 32], strides = [1, 1]} : vector<2x128xf32> to vector<2x32xf32>
    %197 = math.tanh %196 : vector<2x32xf32>
    %198 = vector.extract_strided_slice %158 {offsets = [0, 96], sizes = [2, 32], strides = [1, 1]} : vector<2x128xf32> to vector<2x32xf32>
    %199 = arith.negf %198 : vector<2x32xf32>
    %200 = math.exp %199 : vector<2x32xf32>
    %cst_56 = arith.constant 1.000000e+00 : f32
    %201 = vector.broadcast %cst_56 : f32 to vector<2x32xf32>
    %202 = arith.addf %201, %200 : vector<2x32xf32>
    %203 = arith.divf %201, %202 : vector<2x32xf32>
    %204 = arith.mulf %195, %137 : vector<2x32xf32>
    %205 = arith.mulf %189, %197 : vector<2x32xf32>
    %206 = arith.addf %204, %205 : vector<2x32xf32>
    %207 = math.tanh %206 : vector<2x32xf32>
    %208 = arith.mulf %203, %207 : vector<2x32xf32>
    %209 = arith.index_cast %c2_i32_43 : i32 to index
    %c0_57 = arith.constant 0 : index
    %c0_58 = arith.constant 0 : index
    %210 = vector.load %arg8[%209, %c0_57, %c0_58] : memref<8x2x32xf32, #tpu.memory_space<vmem>>, vector<1x2x32xf32>
    %211 = vector.shape_cast %210 : vector<1x2x32xf32> to vector<2x32xf32>
    %212 = vector.shape_cast %183 : vector<2x32xf32> to vector<1x2x32xf32>
    tpu.vector_store %arg8[%209, %c0_57, %c0_58], %212 {strides = array<i32>} : memref<8x2x32xf32, #tpu.memory_space<vmem>>, vector<1x2x32xf32>,
    %213 = arith.index_cast %148 : i32 to index
    %c0_59 = arith.constant 0 : index
    %c0_60 = arith.constant 0 : index
    %214 = vector.load %arg9[%213, %c0_59, %c0_60] : memref<8x2x32xf32, #tpu.memory_space<vmem>>, vector<1x2x32xf32>
    %215 = vector.shape_cast %214 : vector<1x2x32xf32> to vector<2x32xf32>
    %216 = vector.shape_cast %208 : vector<2x32xf32> to vector<1x2x32xf32>
    tpu.vector_store %arg9[%213, %c0_59, %c0_60], %216 {strides = array<i32>} : memref<8x2x32xf32, #tpu.memory_space<vmem>>, vector<1x2x32xf32>,
    %c3_i32 = arith.constant 3 : i32
    %c7_i32_61 = arith.constant 7 : i32
    %217 = arith.subi %c7_i32_61, %c3_i32 : i32
    %cst_62 = arith.constant dense<0.000000e+00> : vector<2x128xf32>
    %218 = tpu.matmul %183, %7, %cst_62 {dimension_numbers = #tpu.dot_dimension_numbers<[1], [0], [0], [1], [0, 0, 1, 1], [], []>} : vector<2x32xf32>, vector<32x128xf32>, vector<2x128xf32> -> vector<2x128xf32>
    %cst_63 = arith.constant dense<0.000000e+00> : vector<2x128xf32>
    %219 = tpu.matmul %208, %8, %cst_63 {dimension_numbers = #tpu.dot_dimension_numbers<[1], [0], [0], [1], [0, 0, 1, 1], [], []>} : vector<2x32xf32>, vector<32x128xf32>, vector<2x128xf32> -> vector<2x128xf32>
    %c2_i32_64 = arith.constant 2 : i32
    %220 = arith.muli %c3_i32, %c2_i32_64 : i32
    %221 = arith.index_cast %220 : i32 to index
    %c0_65 = arith.constant 0 : index
    %222 = vector.load %arg7[%221, %c0_65] : memref<16x256xf32, #tpu.memory_space<vmem>>, vector<2x128xf32>
    %223 = arith.addf %222, %218 : vector<2x128xf32>
    %c2_i32_66 = arith.constant 2 : i32
    %224 = arith.muli %217, %c2_i32_66 : i32
    %225 = arith.index_cast %224 : i32 to index
    %c128_67 = arith.constant 128 : index
    %226 = vector.load %arg7[%225, %c128_67] : memref<16x256xf32, #tpu.memory_space<vmem>>, vector<2x128xf32>
    %227 = arith.addf %226, %219 : vector<2x128xf32>
    %228 = vector.extract_strided_slice %223 {offsets = [0, 0], sizes = [2, 32], strides = [1, 1]} : vector<2x128xf32> to vector<2x32xf32>
    %229 = arith.negf %228 : vector<2x32xf32>
    %230 = math.exp %229 : vector<2x32xf32>
    %cst_68 = arith.constant 1.000000e+00 : f32
    %231 = vector.broadcast %cst_68 : f32 to vector<2x32xf32>
    %232 = arith.addf %231, %230 : vector<2x32xf32>
    %233 = arith.divf %231, %232 : vector<2x32xf32>
    %234 = vector.extract_strided_slice %223 {offsets = [0, 32], sizes = [2, 32], strides = [1, 1]} : vector<2x128xf32> to vector<2x32xf32>
    %235 = arith.negf %234 : vector<2x32xf32>
    %236 = math.exp %235 : vector<2x32xf32>
    %cst_69 = arith.constant 1.000000e+00 : f32
    %237 = vector.broadcast %cst_69 : f32 to vector<2x32xf32>
    %238 = arith.addf %237, %236 : vector<2x32xf32>
    %239 = arith.divf %237, %238 : vector<2x32xf32>
    %240 = vector.extract_strided_slice %223 {offsets = [0, 64], sizes = [2, 32], strides = [1, 1]} : vector<2x128xf32> to vector<2x32xf32>
    %241 = math.tanh %240 : vector<2x32xf32>
    %242 = vector.extract_strided_slice %223 {offsets = [0, 96], sizes = [2, 32], strides = [1, 1]} : vector<2x128xf32> to vector<2x32xf32>
    %243 = arith.negf %242 : vector<2x32xf32>
    %244 = math.exp %243 : vector<2x32xf32>
    %cst_70 = arith.constant 1.000000e+00 : f32
    %245 = vector.broadcast %cst_70 : f32 to vector<2x32xf32>
    %246 = arith.addf %245, %244 : vector<2x32xf32>
    %247 = arith.divf %245, %246 : vector<2x32xf32>
    %248 = arith.mulf %239, %181 : vector<2x32xf32>
    %249 = arith.mulf %233, %241 : vector<2x32xf32>
    %250 = arith.addf %248, %249 : vector<2x32xf32>
    %251 = math.tanh %250 : vector<2x32xf32>
    %252 = arith.mulf %247, %251 : vector<2x32xf32>
    %253 = vector.extract_strided_slice %227 {offsets = [0, 0], sizes = [2, 32], strides = [1, 1]} : vector<2x128xf32> to vector<2x32xf32>
    %254 = arith.negf %253 : vector<2x32xf32>
    %255 = math.exp %254 : vector<2x32xf32>
    %cst_71 = arith.constant 1.000000e+00 : f32
    %256 = vector.broadcast %cst_71 : f32 to vector<2x32xf32>
    %257 = arith.addf %256, %255 : vector<2x32xf32>
    %258 = arith.divf %256, %257 : vector<2x32xf32>
    %259 = vector.extract_strided_slice %227 {offsets = [0, 32], sizes = [2, 32], strides = [1, 1]} : vector<2x128xf32> to vector<2x32xf32>
    %260 = arith.negf %259 : vector<2x32xf32>
    %261 = math.exp %260 : vector<2x32xf32>
    %cst_72 = arith.constant 1.000000e+00 : f32
    %262 = vector.broadcast %cst_72 : f32 to vector<2x32xf32>
    %263 = arith.addf %262, %261 : vector<2x32xf32>
    %264 = arith.divf %262, %263 : vector<2x32xf32>
    %265 = vector.extract_strided_slice %227 {offsets = [0, 64], sizes = [2, 32], strides = [1, 1]} : vector<2x128xf32> to vector<2x32xf32>
    %266 = math.tanh %265 : vector<2x32xf32>
    %267 = vector.extract_strided_slice %227 {offsets = [0, 96], sizes = [2, 32], strides = [1, 1]} : vector<2x128xf32> to vector<2x32xf32>
    %268 = arith.negf %267 : vector<2x32xf32>
    %269 = math.exp %268 : vector<2x32xf32>
    %cst_73 = arith.constant 1.000000e+00 : f32
    %270 = vector.broadcast %cst_73 : f32 to vector<2x32xf32>
    %271 = arith.addf %270, %269 : vector<2x32xf32>
    %272 = arith.divf %270, %271 : vector<2x32xf32>
    %273 = arith.mulf %264, %206 : vector<2x32xf32>
    %274 = arith.mulf %258, %266 : vector<2x32xf32>
    %275 = arith.addf %273, %274 : vector<2x32xf32>
    %276 = math.tanh %275 : vector<2x32xf32>
    %277 = arith.mulf %272, %276 : vector<2x32xf32>
    %278 = arith.index_cast %c3_i32 : i32 to index
    %c0_74 = arith.constant 0 : index
    %c0_75 = arith.constant 0 : index
    %279 = vector.load %arg8[%278, %c0_74, %c0_75] : memref<8x2x32xf32, #tpu.memory_space<vmem>>, vector<1x2x32xf32>
    %280 = vector.shape_cast %279 : vector<1x2x32xf32> to vector<2x32xf32>
    %281 = vector.shape_cast %252 : vector<2x32xf32> to vector<1x2x32xf32>
    tpu.vector_store %arg8[%278, %c0_74, %c0_75], %281 {strides = array<i32>} : memref<8x2x32xf32, #tpu.memory_space<vmem>>, vector<1x2x32xf32>,
    %282 = arith.index_cast %217 : i32 to index
    %c0_76 = arith.constant 0 : index
    %c0_77 = arith.constant 0 : index
    %283 = vector.load %arg9[%282, %c0_76, %c0_77] : memref<8x2x32xf32, #tpu.memory_space<vmem>>, vector<1x2x32xf32>
    %284 = vector.shape_cast %283 : vector<1x2x32xf32> to vector<2x32xf32>
    %285 = vector.shape_cast %277 : vector<2x32xf32> to vector<1x2x32xf32>
    tpu.vector_store %arg9[%282, %c0_76, %c0_77], %285 {strides = array<i32>} : memref<8x2x32xf32, #tpu.memory_space<vmem>>, vector<1x2x32xf32>,
    %c4_i32 = arith.constant 4 : i32
    %c7_i32_78 = arith.constant 7 : i32
    %286 = arith.subi %c7_i32_78, %c4_i32 : i32
    %cst_79 = arith.constant dense<0.000000e+00> : vector<2x128xf32>
    %287 = tpu.matmul %252, %7, %cst_79 {dimension_numbers = #tpu.dot_dimension_numbers<[1], [0], [0], [1], [0, 0, 1, 1], [], []>} : vector<2x32xf32>, vector<32x128xf32>, vector<2x128xf32> -> vector<2x128xf32>
    %cst_80 = arith.constant dense<0.000000e+00> : vector<2x128xf32>
    %288 = tpu.matmul %277, %8, %cst_80 {dimension_numbers = #tpu.dot_dimension_numbers<[1], [0], [0], [1], [0, 0, 1, 1], [], []>} : vector<2x32xf32>, vector<32x128xf32>, vector<2x128xf32> -> vector<2x128xf32>
    %c2_i32_81 = arith.constant 2 : i32
    %289 = arith.muli %c4_i32, %c2_i32_81 : i32
    %290 = arith.index_cast %289 : i32 to index
    %c0_82 = arith.constant 0 : index
    %291 = vector.load %arg7[%290, %c0_82] : memref<16x256xf32, #tpu.memory_space<vmem>>, vector<2x128xf32>
    %292 = arith.addf %291, %287 : vector<2x128xf32>
    %c2_i32_83 = arith.constant 2 : i32
    %293 = arith.muli %286, %c2_i32_83 : i32
    %294 = arith.index_cast %293 : i32 to index
    %c128_84 = arith.constant 128 : index
    %295 = vector.load %arg7[%294, %c128_84] : memref<16x256xf32, #tpu.memory_space<vmem>>, vector<2x128xf32>
    %296 = arith.addf %295, %288 : vector<2x128xf32>
    %297 = vector.extract_strided_slice %292 {offsets = [0, 0], sizes = [2, 32], strides = [1, 1]} : vector<2x128xf32> to vector<2x32xf32>
    %298 = arith.negf %297 : vector<2x32xf32>
    %299 = math.exp %298 : vector<2x32xf32>
    %cst_85 = arith.constant 1.000000e+00 : f32
    %300 = vector.broadcast %cst_85 : f32 to vector<2x32xf32>
    %301 = arith.addf %300, %299 : vector<2x32xf32>
    %302 = arith.divf %300, %301 : vector<2x32xf32>
    %303 = vector.extract_strided_slice %292 {offsets = [0, 32], sizes = [2, 32], strides = [1, 1]} : vector<2x128xf32> to vector<2x32xf32>
    %304 = arith.negf %303 : vector<2x32xf32>
    %305 = math.exp %304 : vector<2x32xf32>
    %cst_86 = arith.constant 1.000000e+00 : f32
    %306 = vector.broadcast %cst_86 : f32 to vector<2x32xf32>
    %307 = arith.addf %306, %305 : vector<2x32xf32>
    %308 = arith.divf %306, %307 : vector<2x32xf32>
    %309 = vector.extract_strided_slice %292 {offsets = [0, 64], sizes = [2, 32], strides = [1, 1]} : vector<2x128xf32> to vector<2x32xf32>
    %310 = math.tanh %309 : vector<2x32xf32>
    %311 = vector.extract_strided_slice %292 {offsets = [0, 96], sizes = [2, 32], strides = [1, 1]} : vector<2x128xf32> to vector<2x32xf32>
    %312 = arith.negf %311 : vector<2x32xf32>
    %313 = math.exp %312 : vector<2x32xf32>
    %cst_87 = arith.constant 1.000000e+00 : f32
    %314 = vector.broadcast %cst_87 : f32 to vector<2x32xf32>
    %315 = arith.addf %314, %313 : vector<2x32xf32>
    %316 = arith.divf %314, %315 : vector<2x32xf32>
    %317 = arith.mulf %308, %250 : vector<2x32xf32>
    %318 = arith.mulf %302, %310 : vector<2x32xf32>
    %319 = arith.addf %317, %318 : vector<2x32xf32>
    %320 = math.tanh %319 : vector<2x32xf32>
    %321 = arith.mulf %316, %320 : vector<2x32xf32>
    %322 = vector.extract_strided_slice %296 {offsets = [0, 0], sizes = [2, 32], strides = [1, 1]} : vector<2x128xf32> to vector<2x32xf32>
    %323 = arith.negf %322 : vector<2x32xf32>
    %324 = math.exp %323 : vector<2x32xf32>
    %cst_88 = arith.constant 1.000000e+00 : f32
    %325 = vector.broadcast %cst_88 : f32 to vector<2x32xf32>
    %326 = arith.addf %325, %324 : vector<2x32xf32>
    %327 = arith.divf %325, %326 : vector<2x32xf32>
    %328 = vector.extract_strided_slice %296 {offsets = [0, 32], sizes = [2, 32], strides = [1, 1]} : vector<2x128xf32> to vector<2x32xf32>
    %329 = arith.negf %328 : vector<2x32xf32>
    %330 = math.exp %329 : vector<2x32xf32>
    %cst_89 = arith.constant 1.000000e+00 : f32
    %331 = vector.broadcast %cst_89 : f32 to vector<2x32xf32>
    %332 = arith.addf %331, %330 : vector<2x32xf32>
    %333 = arith.divf %331, %332 : vector<2x32xf32>
    %334 = vector.extract_strided_slice %296 {offsets = [0, 64], sizes = [2, 32], strides = [1, 1]} : vector<2x128xf32> to vector<2x32xf32>
    %335 = math.tanh %334 : vector<2x32xf32>
    %336 = vector.extract_strided_slice %296 {offsets = [0, 96], sizes = [2, 32], strides = [1, 1]} : vector<2x128xf32> to vector<2x32xf32>
    %337 = arith.negf %336 : vector<2x32xf32>
    %338 = math.exp %337 : vector<2x32xf32>
    %cst_90 = arith.constant 1.000000e+00 : f32
    %339 = vector.broadcast %cst_90 : f32 to vector<2x32xf32>
    %340 = arith.addf %339, %338 : vector<2x32xf32>
    %341 = arith.divf %339, %340 : vector<2x32xf32>
    %342 = arith.mulf %333, %275 : vector<2x32xf32>
    %343 = arith.mulf %327, %335 : vector<2x32xf32>
    %344 = arith.addf %342, %343 : vector<2x32xf32>
    %345 = math.tanh %344 : vector<2x32xf32>
    %346 = arith.mulf %341, %345 : vector<2x32xf32>
    %347 = arith.index_cast %c4_i32 : i32 to index
    %c0_91 = arith.constant 0 : index
    %c0_92 = arith.constant 0 : index
    %348 = vector.load %arg8[%347, %c0_91, %c0_92] : memref<8x2x32xf32, #tpu.memory_space<vmem>>, vector<1x2x32xf32>
    %349 = vector.shape_cast %348 : vector<1x2x32xf32> to vector<2x32xf32>
    %350 = vector.shape_cast %321 : vector<2x32xf32> to vector<1x2x32xf32>
    tpu.vector_store %arg8[%347, %c0_91, %c0_92], %350 {strides = array<i32>} : memref<8x2x32xf32, #tpu.memory_space<vmem>>, vector<1x2x32xf32>,
    %351 = arith.index_cast %286 : i32 to index
    %c0_93 = arith.constant 0 : index
    %c0_94 = arith.constant 0 : index
    %352 = vector.load %arg9[%351, %c0_93, %c0_94] : memref<8x2x32xf32, #tpu.memory_space<vmem>>, vector<1x2x32xf32>
    %353 = vector.shape_cast %352 : vector<1x2x32xf32> to vector<2x32xf32>
    %354 = vector.shape_cast %346 : vector<2x32xf32> to vector<1x2x32xf32>
    tpu.vector_store %arg9[%351, %c0_93, %c0_94], %354 {strides = array<i32>} : memref<8x2x32xf32, #tpu.memory_space<vmem>>, vector<1x2x32xf32>,
    %c5_i32 = arith.constant 5 : i32
    %c7_i32_95 = arith.constant 7 : i32
    %355 = arith.subi %c7_i32_95, %c5_i32 : i32
    %cst_96 = arith.constant dense<0.000000e+00> : vector<2x128xf32>
    %356 = tpu.matmul %321, %7, %cst_96 {dimension_numbers = #tpu.dot_dimension_numbers<[1], [0], [0], [1], [0, 0, 1, 1], [], []>} : vector<2x32xf32>, vector<32x128xf32>, vector<2x128xf32> -> vector<2x128xf32>
    %cst_97 = arith.constant dense<0.000000e+00> : vector<2x128xf32>
    %357 = tpu.matmul %346, %8, %cst_97 {dimension_numbers = #tpu.dot_dimension_numbers<[1], [0], [0], [1], [0, 0, 1, 1], [], []>} : vector<2x32xf32>, vector<32x128xf32>, vector<2x128xf32> -> vector<2x128xf32>
    %c2_i32_98 = arith.constant 2 : i32
    %358 = arith.muli %c5_i32, %c2_i32_98 : i32
    %359 = arith.index_cast %358 : i32 to index
    %c0_99 = arith.constant 0 : index
    %360 = vector.load %arg7[%359, %c0_99] : memref<16x256xf32, #tpu.memory_space<vmem>>, vector<2x128xf32>
    %361 = arith.addf %360, %356 : vector<2x128xf32>
    %c2_i32_100 = arith.constant 2 : i32
    %362 = arith.muli %355, %c2_i32_100 : i32
    %363 = arith.index_cast %362 : i32 to index
    %c128_101 = arith.constant 128 : index
    %364 = vector.load %arg7[%363, %c128_101] : memref<16x256xf32, #tpu.memory_space<vmem>>, vector<2x128xf32>
    %365 = arith.addf %364, %357 : vector<2x128xf32>
    %366 = vector.extract_strided_slice %361 {offsets = [0, 0], sizes = [2, 32], strides = [1, 1]} : vector<2x128xf32> to vector<2x32xf32>
    %367 = arith.negf %366 : vector<2x32xf32>
    %368 = math.exp %367 : vector<2x32xf32>
    %cst_102 = arith.constant 1.000000e+00 : f32
    %369 = vector.broadcast %cst_102 : f32 to vector<2x32xf32>
    %370 = arith.addf %369, %368 : vector<2x32xf32>
    %371 = arith.divf %369, %370 : vector<2x32xf32>
    %372 = vector.extract_strided_slice %361 {offsets = [0, 32], sizes = [2, 32], strides = [1, 1]} : vector<2x128xf32> to vector<2x32xf32>
    %373 = arith.negf %372 : vector<2x32xf32>
    %374 = math.exp %373 : vector<2x32xf32>
    %cst_103 = arith.constant 1.000000e+00 : f32
    %375 = vector.broadcast %cst_103 : f32 to vector<2x32xf32>
    %376 = arith.addf %375, %374 : vector<2x32xf32>
    %377 = arith.divf %375, %376 : vector<2x32xf32>
    %378 = vector.extract_strided_slice %361 {offsets = [0, 64], sizes = [2, 32], strides = [1, 1]} : vector<2x128xf32> to vector<2x32xf32>
    %379 = math.tanh %378 : vector<2x32xf32>
    %380 = vector.extract_strided_slice %361 {offsets = [0, 96], sizes = [2, 32], strides = [1, 1]} : vector<2x128xf32> to vector<2x32xf32>
    %381 = arith.negf %380 : vector<2x32xf32>
    %382 = math.exp %381 : vector<2x32xf32>
    %cst_104 = arith.constant 1.000000e+00 : f32
    %383 = vector.broadcast %cst_104 : f32 to vector<2x32xf32>
    %384 = arith.addf %383, %382 : vector<2x32xf32>
    %385 = arith.divf %383, %384 : vector<2x32xf32>
    %386 = arith.mulf %377, %319 : vector<2x32xf32>
    %387 = arith.mulf %371, %379 : vector<2x32xf32>
    %388 = arith.addf %386, %387 : vector<2x32xf32>
    %389 = math.tanh %388 : vector<2x32xf32>
    %390 = arith.mulf %385, %389 : vector<2x32xf32>
    %391 = vector.extract_strided_slice %365 {offsets = [0, 0], sizes = [2, 32], strides = [1, 1]} : vector<2x128xf32> to vector<2x32xf32>
    %392 = arith.negf %391 : vector<2x32xf32>
    %393 = math.exp %392 : vector<2x32xf32>
    %cst_105 = arith.constant 1.000000e+00 : f32
    %394 = vector.broadcast %cst_105 : f32 to vector<2x32xf32>
    %395 = arith.addf %394, %393 : vector<2x32xf32>
    %396 = arith.divf %394, %395 : vector<2x32xf32>
    %397 = vector.extract_strided_slice %365 {offsets = [0, 32], sizes = [2, 32], strides = [1, 1]} : vector<2x128xf32> to vector<2x32xf32>
    %398 = arith.negf %397 : vector<2x32xf32>
    %399 = math.exp %398 : vector<2x32xf32>
    %cst_106 = arith.constant 1.000000e+00 : f32
    %400 = vector.broadcast %cst_106 : f32 to vector<2x32xf32>
    %401 = arith.addf %400, %399 : vector<2x32xf32>
    %402 = arith.divf %400, %401 : vector<2x32xf32>
    %403 = vector.extract_strided_slice %365 {offsets = [0, 64], sizes = [2, 32], strides = [1, 1]} : vector<2x128xf32> to vector<2x32xf32>
    %404 = math.tanh %403 : vector<2x32xf32>
    %405 = vector.extract_strided_slice %365 {offsets = [0, 96], sizes = [2, 32], strides = [1, 1]} : vector<2x128xf32> to vector<2x32xf32>
    %406 = arith.negf %405 : vector<2x32xf32>
    %407 = math.exp %406 : vector<2x32xf32>
    %cst_107 = arith.constant 1.000000e+00 : f32
    %408 = vector.broadcast %cst_107 : f32 to vector<2x32xf32>
    %409 = arith.addf %408, %407 : vector<2x32xf32>
    %410 = arith.divf %408, %409 : vector<2x32xf32>
    %411 = arith.mulf %402, %344 : vector<2x32xf32>
    %412 = arith.mulf %396, %404 : vector<2x32xf32>
    %413 = arith.addf %411, %412 : vector<2x32xf32>
    %414 = math.tanh %413 : vector<2x32xf32>
    %415 = arith.mulf %410, %414 : vector<2x32xf32>
    %416 = arith.index_cast %c5_i32 : i32 to index
    %c0_108 = arith.constant 0 : index
    %c0_109 = arith.constant 0 : index
    %417 = vector.load %arg8[%416, %c0_108, %c0_109] : memref<8x2x32xf32, #tpu.memory_space<vmem>>, vector<1x2x32xf32>
    %418 = vector.shape_cast %417 : vector<1x2x32xf32> to vector<2x32xf32>
    %419 = vector.shape_cast %390 : vector<2x32xf32> to vector<1x2x32xf32>
    tpu.vector_store %arg8[%416, %c0_108, %c0_109], %419 {strides = array<i32>} : memref<8x2x32xf32, #tpu.memory_space<vmem>>, vector<1x2x32xf32>,
    %420 = arith.index_cast %355 : i32 to index
    %c0_110 = arith.constant 0 : index
    %c0_111 = arith.constant 0 : index
    %421 = vector.load %arg9[%420, %c0_110, %c0_111] : memref<8x2x32xf32, #tpu.memory_space<vmem>>, vector<1x2x32xf32>
    %422 = vector.shape_cast %421 : vector<1x2x32xf32> to vector<2x32xf32>
    %423 = vector.shape_cast %415 : vector<2x32xf32> to vector<1x2x32xf32>
    tpu.vector_store %arg9[%420, %c0_110, %c0_111], %423 {strides = array<i32>} : memref<8x2x32xf32, #tpu.memory_space<vmem>>, vector<1x2x32xf32>,
    %c6_i32 = arith.constant 6 : i32
    %c7_i32_112 = arith.constant 7 : i32
    %424 = arith.subi %c7_i32_112, %c6_i32 : i32
    %cst_113 = arith.constant dense<0.000000e+00> : vector<2x128xf32>
    %425 = tpu.matmul %390, %7, %cst_113 {dimension_numbers = #tpu.dot_dimension_numbers<[1], [0], [0], [1], [0, 0, 1, 1], [], []>} : vector<2x32xf32>, vector<32x128xf32>, vector<2x128xf32> -> vector<2x128xf32>
    %cst_114 = arith.constant dense<0.000000e+00> : vector<2x128xf32>
    %426 = tpu.matmul %415, %8, %cst_114 {dimension_numbers = #tpu.dot_dimension_numbers<[1], [0], [0], [1], [0, 0, 1, 1], [], []>} : vector<2x32xf32>, vector<32x128xf32>, vector<2x128xf32> -> vector<2x128xf32>
    %c2_i32_115 = arith.constant 2 : i32
    %427 = arith.muli %c6_i32, %c2_i32_115 : i32
    %428 = arith.index_cast %427 : i32 to index
    %c0_116 = arith.constant 0 : index
    %429 = vector.load %arg7[%428, %c0_116] : memref<16x256xf32, #tpu.memory_space<vmem>>, vector<2x128xf32>
    %430 = arith.addf %429, %425 : vector<2x128xf32>
    %c2_i32_117 = arith.constant 2 : i32
    %431 = arith.muli %424, %c2_i32_117 : i32
    %432 = arith.index_cast %431 : i32 to index
    %c128_118 = arith.constant 128 : index
    %433 = vector.load %arg7[%432, %c128_118] : memref<16x256xf32, #tpu.memory_space<vmem>>, vector<2x128xf32>
    %434 = arith.addf %433, %426 : vector<2x128xf32>
    %435 = vector.extract_strided_slice %430 {offsets = [0, 0], sizes = [2, 32], strides = [1, 1]} : vector<2x128xf32> to vector<2x32xf32>
    %436 = arith.negf %435 : vector<2x32xf32>
    %437 = math.exp %436 : vector<2x32xf32>
    %cst_119 = arith.constant 1.000000e+00 : f32
    %438 = vector.broadcast %cst_119 : f32 to vector<2x32xf32>
    %439 = arith.addf %438, %437 : vector<2x32xf32>
    %440 = arith.divf %438, %439 : vector<2x32xf32>
    %441 = vector.extract_strided_slice %430 {offsets = [0, 32], sizes = [2, 32], strides = [1, 1]} : vector<2x128xf32> to vector<2x32xf32>
    %442 = arith.negf %441 : vector<2x32xf32>
    %443 = math.exp %442 : vector<2x32xf32>
    %cst_120 = arith.constant 1.000000e+00 : f32
    %444 = vector.broadcast %cst_120 : f32 to vector<2x32xf32>
    %445 = arith.addf %444, %443 : vector<2x32xf32>
    %446 = arith.divf %444, %445 : vector<2x32xf32>
    %447 = vector.extract_strided_slice %430 {offsets = [0, 64], sizes = [2, 32], strides = [1, 1]} : vector<2x128xf32> to vector<2x32xf32>
    %448 = math.tanh %447 : vector<2x32xf32>
    %449 = vector.extract_strided_slice %430 {offsets = [0, 96], sizes = [2, 32], strides = [1, 1]} : vector<2x128xf32> to vector<2x32xf32>
    %450 = arith.negf %449 : vector<2x32xf32>
    %451 = math.exp %450 : vector<2x32xf32>
    %cst_121 = arith.constant 1.000000e+00 : f32
    %452 = vector.broadcast %cst_121 : f32 to vector<2x32xf32>
    %453 = arith.addf %452, %451 : vector<2x32xf32>
    %454 = arith.divf %452, %453 : vector<2x32xf32>
    %455 = arith.mulf %446, %388 : vector<2x32xf32>
    %456 = arith.mulf %440, %448 : vector<2x32xf32>
    %457 = arith.addf %455, %456 : vector<2x32xf32>
    %458 = math.tanh %457 : vector<2x32xf32>
    %459 = arith.mulf %454, %458 : vector<2x32xf32>
    %460 = vector.extract_strided_slice %434 {offsets = [0, 0], sizes = [2, 32], strides = [1, 1]} : vector<2x128xf32> to vector<2x32xf32>
    %461 = arith.negf %460 : vector<2x32xf32>
    %462 = math.exp %461 : vector<2x32xf32>
    %cst_122 = arith.constant 1.000000e+00 : f32
    %463 = vector.broadcast %cst_122 : f32 to vector<2x32xf32>
    %464 = arith.addf %463, %462 : vector<2x32xf32>
    %465 = arith.divf %463, %464 : vector<2x32xf32>
    %466 = vector.extract_strided_slice %434 {offsets = [0, 32], sizes = [2, 32], strides = [1, 1]} : vector<2x128xf32> to vector<2x32xf32>
    %467 = arith.negf %466 : vector<2x32xf32>
    %468 = math.exp %467 : vector<2x32xf32>
    %cst_123 = arith.constant 1.000000e+00 : f32
    %469 = vector.broadcast %cst_123 : f32 to vector<2x32xf32>
    %470 = arith.addf %469, %468 : vector<2x32xf32>
    %471 = arith.divf %469, %470 : vector<2x32xf32>
    %472 = vector.extract_strided_slice %434 {offsets = [0, 64], sizes = [2, 32], strides = [1, 1]} : vector<2x128xf32> to vector<2x32xf32>
    %473 = math.tanh %472 : vector<2x32xf32>
    %474 = vector.extract_strided_slice %434 {offsets = [0, 96], sizes = [2, 32], strides = [1, 1]} : vector<2x128xf32> to vector<2x32xf32>
    %475 = arith.negf %474 : vector<2x32xf32>
    %476 = math.exp %475 : vector<2x32xf32>
    %cst_124 = arith.constant 1.000000e+00 : f32
    %477 = vector.broadcast %cst_124 : f32 to vector<2x32xf32>
    %478 = arith.addf %477, %476 : vector<2x32xf32>
    %479 = arith.divf %477, %478 : vector<2x32xf32>
    %480 = arith.mulf %471, %413 : vector<2x32xf32>
    %481 = arith.mulf %465, %473 : vector<2x32xf32>
    %482 = arith.addf %480, %481 : vector<2x32xf32>
    %483 = math.tanh %482 : vector<2x32xf32>
    %484 = arith.mulf %479, %483 : vector<2x32xf32>
    %485 = arith.index_cast %c6_i32 : i32 to index
    %c0_125 = arith.constant 0 : index
    %c0_126 = arith.constant 0 : index
    %486 = vector.load %arg8[%485, %c0_125, %c0_126] : memref<8x2x32xf32, #tpu.memory_space<vmem>>, vector<1x2x32xf32>
    %487 = vector.shape_cast %486 : vector<1x2x32xf32> to vector<2x32xf32>
    %488 = vector.shape_cast %459 : vector<2x32xf32> to vector<1x2x32xf32>
    tpu.vector_store %arg8[%485, %c0_125, %c0_126], %488 {strides = array<i32>} : memref<8x2x32xf32, #tpu.memory_space<vmem>>, vector<1x2x32xf32>,
    %489 = arith.index_cast %424 : i32 to index
    %c0_127 = arith.constant 0 : index
    %c0_128 = arith.constant 0 : index
    %490 = vector.load %arg9[%489, %c0_127, %c0_128] : memref<8x2x32xf32, #tpu.memory_space<vmem>>, vector<1x2x32xf32>
    %491 = vector.shape_cast %490 : vector<1x2x32xf32> to vector<2x32xf32>
    %492 = vector.shape_cast %484 : vector<2x32xf32> to vector<1x2x32xf32>
    tpu.vector_store %arg9[%489, %c0_127, %c0_128], %492 {strides = array<i32>} : memref<8x2x32xf32, #tpu.memory_space<vmem>>, vector<1x2x32xf32>,
    %c7_i32_129 = arith.constant 7 : i32
    %c7_i32_130 = arith.constant 7 : i32
    %493 = arith.subi %c7_i32_130, %c7_i32_129 : i32
    %cst_131 = arith.constant dense<0.000000e+00> : vector<2x128xf32>
    %494 = tpu.matmul %459, %7, %cst_131 {dimension_numbers = #tpu.dot_dimension_numbers<[1], [0], [0], [1], [0, 0, 1, 1], [], []>} : vector<2x32xf32>, vector<32x128xf32>, vector<2x128xf32> -> vector<2x128xf32>
    %cst_132 = arith.constant dense<0.000000e+00> : vector<2x128xf32>
    %495 = tpu.matmul %484, %8, %cst_132 {dimension_numbers = #tpu.dot_dimension_numbers<[1], [0], [0], [1], [0, 0, 1, 1], [], []>} : vector<2x32xf32>, vector<32x128xf32>, vector<2x128xf32> -> vector<2x128xf32>
    %c2_i32_133 = arith.constant 2 : i32
    %496 = arith.muli %c7_i32_129, %c2_i32_133 : i32
    %497 = arith.index_cast %496 : i32 to index
    %c0_134 = arith.constant 0 : index
    %498 = vector.load %arg7[%497, %c0_134] : memref<16x256xf32, #tpu.memory_space<vmem>>, vector<2x128xf32>
    %499 = arith.addf %498, %494 : vector<2x128xf32>
    %c2_i32_135 = arith.constant 2 : i32
    %500 = arith.muli %493, %c2_i32_135 : i32
    %501 = arith.index_cast %500 : i32 to index
    %c128_136 = arith.constant 128 : index
    %502 = vector.load %arg7[%501, %c128_136] : memref<16x256xf32, #tpu.memory_space<vmem>>, vector<2x128xf32>
    %503 = arith.addf %502, %495 : vector<2x128xf32>
    %504 = vector.extract_strided_slice %499 {offsets = [0, 0], sizes = [2, 32], strides = [1, 1]} : vector<2x128xf32> to vector<2x32xf32>
    %505 = arith.negf %504 : vector<2x32xf32>
    %506 = math.exp %505 : vector<2x32xf32>
    %cst_137 = arith.constant 1.000000e+00 : f32
    %507 = vector.broadcast %cst_137 : f32 to vector<2x32xf32>
    %508 = arith.addf %507, %506 : vector<2x32xf32>
    %509 = arith.divf %507, %508 : vector<2x32xf32>
    %510 = vector.extract_strided_slice %499 {offsets = [0, 32], sizes = [2, 32], strides = [1, 1]} : vector<2x128xf32> to vector<2x32xf32>
    %511 = arith.negf %510 : vector<2x32xf32>
    %512 = math.exp %511 : vector<2x32xf32>
    %cst_138 = arith.constant 1.000000e+00 : f32
    %513 = vector.broadcast %cst_138 : f32 to vector<2x32xf32>
    %514 = arith.addf %513, %512 : vector<2x32xf32>
    %515 = arith.divf %513, %514 : vector<2x32xf32>
    %516 = vector.extract_strided_slice %499 {offsets = [0, 64], sizes = [2, 32], strides = [1, 1]} : vector<2x128xf32> to vector<2x32xf32>
    %517 = math.tanh %516 : vector<2x32xf32>
    %518 = vector.extract_strided_slice %499 {offsets = [0, 96], sizes = [2, 32], strides = [1, 1]} : vector<2x128xf32> to vector<2x32xf32>
    %519 = arith.negf %518 : vector<2x32xf32>
    %520 = math.exp %519 : vector<2x32xf32>
    %cst_139 = arith.constant 1.000000e+00 : f32
    %521 = vector.broadcast %cst_139 : f32 to vector<2x32xf32>
    %522 = arith.addf %521, %520 : vector<2x32xf32>
    %523 = arith.divf %521, %522 : vector<2x32xf32>
    %524 = arith.mulf %515, %457 : vector<2x32xf32>
    %525 = arith.mulf %509, %517 : vector<2x32xf32>
    %526 = arith.addf %524, %525 : vector<2x32xf32>
    %527 = math.tanh %526 : vector<2x32xf32>
    %528 = arith.mulf %523, %527 : vector<2x32xf32>
    %529 = vector.extract_strided_slice %503 {offsets = [0, 0], sizes = [2, 32], strides = [1, 1]} : vector<2x128xf32> to vector<2x32xf32>
    %530 = arith.negf %529 : vector<2x32xf32>
    %531 = math.exp %530 : vector<2x32xf32>
    %cst_140 = arith.constant 1.000000e+00 : f32
    %532 = vector.broadcast %cst_140 : f32 to vector<2x32xf32>
    %533 = arith.addf %532, %531 : vector<2x32xf32>
    %534 = arith.divf %532, %533 : vector<2x32xf32>
    %535 = vector.extract_strided_slice %503 {offsets = [0, 32], sizes = [2, 32], strides = [1, 1]} : vector<2x128xf32> to vector<2x32xf32>
    %536 = arith.negf %535 : vector<2x32xf32>
    %537 = math.exp %536 : vector<2x32xf32>
    %cst_141 = arith.constant 1.000000e+00 : f32
    %538 = vector.broadcast %cst_141 : f32 to vector<2x32xf32>
    %539 = arith.addf %538, %537 : vector<2x32xf32>
    %540 = arith.divf %538, %539 : vector<2x32xf32>
    %541 = vector.extract_strided_slice %503 {offsets = [0, 64], sizes = [2, 32], strides = [1, 1]} : vector<2x128xf32> to vector<2x32xf32>
    %542 = math.tanh %541 : vector<2x32xf32>
    %543 = vector.extract_strided_slice %503 {offsets = [0, 96], sizes = [2, 32], strides = [1, 1]} : vector<2x128xf32> to vector<2x32xf32>
    %544 = arith.negf %543 : vector<2x32xf32>
    %545 = math.exp %544 : vector<2x32xf32>
    %cst_142 = arith.constant 1.000000e+00 : f32
    %546 = vector.broadcast %cst_142 : f32 to vector<2x32xf32>
    %547 = arith.addf %546, %545 : vector<2x32xf32>
    %548 = arith.divf %546, %547 : vector<2x32xf32>
    %549 = arith.mulf %540, %482 : vector<2x32xf32>
    %550 = arith.mulf %534, %542 : vector<2x32xf32>
    %551 = arith.addf %549, %550 : vector<2x32xf32>
    %552 = math.tanh %551 : vector<2x32xf32>
    %553 = arith.mulf %548, %552 : vector<2x32xf32>
    %554 = arith.index_cast %c7_i32_129 : i32 to index
    %c0_143 = arith.constant 0 : index
    %c0_144 = arith.constant 0 : index
    %555 = vector.load %arg8[%554, %c0_143, %c0_144] : memref<8x2x32xf32, #tpu.memory_space<vmem>>, vector<1x2x32xf32>
    %556 = vector.shape_cast %555 : vector<1x2x32xf32> to vector<2x32xf32>
    %557 = vector.shape_cast %528 : vector<2x32xf32> to vector<1x2x32xf32>
    tpu.vector_store %arg8[%554, %c0_143, %c0_144], %557 {strides = array<i32>} : memref<8x2x32xf32, #tpu.memory_space<vmem>>, vector<1x2x32xf32>,
    %558 = arith.index_cast %493 : i32 to index
    %c0_145 = arith.constant 0 : index
    %c0_146 = arith.constant 0 : index
    %559 = vector.load %arg9[%558, %c0_145, %c0_146] : memref<8x2x32xf32, #tpu.memory_space<vmem>>, vector<1x2x32xf32>
    %560 = vector.shape_cast %559 : vector<1x2x32xf32> to vector<2x32xf32>
    %561 = vector.shape_cast %553 : vector<2x32xf32> to vector<1x2x32xf32>
    tpu.vector_store %arg9[%558, %c0_145, %c0_146], %561 {strides = array<i32>} : memref<8x2x32xf32, #tpu.memory_space<vmem>>, vector<1x2x32xf32>,
    %c8_i32 = arith.constant 8 : i32
    %c0_147 = arith.constant 0 : index
    %c0_148 = arith.constant 0 : index
    %c0_149 = arith.constant 0 : index
    %562 = vector.load %arg8[%c0_147, %c0_148, %c0_149] : memref<8x2x32xf32, #tpu.memory_space<vmem>>, vector<8x2x32xf32>
    %c0_150 = arith.constant 0 : index
    %c0_151 = arith.constant 0 : index
    %c0_152 = arith.constant 0 : index
    %563 = vector.load %arg9[%c0_150, %c0_151, %c0_152] : memref<8x2x32xf32, #tpu.memory_space<vmem>>, vector<8x2x32xf32>
    %564 = vector.shape_cast %528 : vector<2x32xf32> to vector<1x2x32xf32>
    %565 = vector.broadcast %564 : vector<1x2x32xf32> to vector<8x2x32xf32>
    %566 = arith.mulf %562, %565 : vector<8x2x32xf32>
    %cst_153 = arith.constant dense<0.000000e+00> : vector<8x2xf32>
    %567 = vector.multi_reduction <add>, %566, %cst_153 [2] : vector<8x2x32xf32> to vector<8x2xf32>
    %568 = vector.shape_cast %553 : vector<2x32xf32> to vector<1x2x32xf32>
    %569 = vector.broadcast %568 : vector<1x2x32xf32> to vector<8x2x32xf32>
    %570 = arith.mulf %563, %569 : vector<8x2x32xf32>
    %cst_154 = arith.constant dense<0.000000e+00> : vector<8x2xf32>
    %571 = vector.multi_reduction <add>, %570, %cst_154 [2] : vector<8x2x32xf32> to vector<8x2xf32>
    %572 = arith.addf %567, %571 : vector<8x2xf32>
    %573 = tpu.transpose %572, [1, 0] : vector<8x2xf32> -> vector<2x8xf32>
    %cst_155 = arith.constant dense<0xFF800000> : vector<2xf32>
    %574 = vector.multi_reduction <maximumf>, %573, %cst_155 [1] : vector<2x8xf32> to vector<2xf32>
    %575 = vector.shape_cast %574 : vector<2xf32> to vector<2x1xf32>
    %576 = vector.broadcast %575 : vector<2x1xf32> to vector<2x8xf32>
    %577 = arith.subf %573, %576 : vector<2x8xf32>
    %578 = math.exp %577 : vector<2x8xf32>
    %cst_156 = arith.constant dense<0.000000e+00> : vector<2xf32>
    %579 = vector.multi_reduction <add>, %578, %cst_156 [1] : vector<2x8xf32> to vector<2xf32>
    %580 = vector.shape_cast %579 : vector<2xf32> to vector<2x1xf32>
    %581 = vector.broadcast %580 : vector<2x1xf32> to vector<2x8xf32>
    %582 = arith.divf %578, %581 : vector<2x8xf32>
    %c0_157 = arith.constant 0 : index
    %c0_158 = arith.constant 0 : index
    %583 = vector.load %arg6[%c0_157, %c0_158] : memref<2x8xf32, #tpu.memory_space<vmem>>, vector<2x8xf32>
    tpu.vector_store %arg6[%c0_157, %c0_158], %582 {strides = array<i32>} : memref<2x8xf32, #tpu.memory_space<vmem>>, vector<2x8xf32>,
    %584 = tpu.transpose %582, [1, 0] : vector<2x8xf32> -> vector<8x2xf32>
    %585 = vector.shape_cast %584 : vector<8x2xf32> to vector<8x2x1xf32>
    %586 = vector.broadcast %585 : vector<8x2x1xf32> to vector<8x2x32xf32>
    %587 = arith.mulf %586, %562 : vector<8x2x32xf32>
    %cst_159 = arith.constant dense<0.000000e+00> : vector<2x32xf32>
    %588 = vector.multi_reduction <add>, %587, %cst_159 [0] : vector<8x2x32xf32> to vector<2x32xf32>
    %c0_160 = arith.constant 0 : index
    %c0_161 = arith.constant 0 : index
    %589 = vector.load %arg5[%c0_160, %c0_161] : memref<2x64xf32, #tpu.memory_space<vmem>>, vector<2x32xf32>
    tpu.vector_store %arg5[%c0_160, %c0_161], %588 {strides = array<i32>} : memref<2x64xf32, #tpu.memory_space<vmem>>, vector<2x32xf32>,
    %590 = vector.broadcast %585 : vector<8x2x1xf32> to vector<8x2x32xf32>
    %591 = arith.mulf %590, %563 : vector<8x2x32xf32>
    %cst_162 = arith.constant dense<0.000000e+00> : vector<2x32xf32>
    %592 = vector.multi_reduction <add>, %591, %cst_162 [0] : vector<8x2x32xf32> to vector<2x32xf32>
    %c0_163 = arith.constant 0 : index
    %c32 = arith.constant 32 : index
    %593 = vector.load %arg5[%c0_163, %c32] : memref<2x64xf32, #tpu.memory_space<vmem>>, vector<2x32xf32>
    tpu.vector_store %arg5[%c0_163, %c32], %592 {strides = array<i32>} : memref<2x64xf32, #tpu.memory_space<vmem>>, vector<2x32xf32>,
    return
  }
}

</mosaic_0001>

<bundles_post_ra>
// kernel: tpu_custom_call.1
= control target key start
LH: loop header
LB: loop body
LE: loop exit
PB: predicated region body
PF: predicated region fallthrough
CT: control target
= control target key end

     0   :  { %12 = vsyncpa [#allocation6], 0  ;;  %s3479_s0 = inlined_call_operand.hbm [shape: f32[16,16], index: 0, kind: input, shape index: {}]   ;;  %s3480_s1 = inlined_call_operand.hbm [shape: f32[16,256], index: 1, kind: input, shape index: {}]   ;;  %s3481_s2 = inlined_call_operand.vmem [shape: f32[1,256], index: 2, kind: input, shape index: {}]   ;;  %s3482_s3 = inlined_call_operand.hbm [shape: f32[32,128], index: 3, kind: input, shape index: {}]   ;;  %s3483_s4 = inlined_call_operand.hbm [shape: f32[32,128], index: 4, kind: input, shape index: {}]   ;;  %s3484_s5 = inlined_call_operand.hbm [shape: f32[2,64], index: 5, kind: output, shape index: {0}]   ;;  %s3485_s6 = inlined_call_operand.hbm [shape: f32[2,8], index: 6, kind: output, shape index: {1}]  }
   0x1   :  { %13 = vsyncpa [#allocation9], 0 }
   0x2   :  { %14 = vsyncpa [#allocation12], 0 }
   0x3   :  { %15 = vsyncpa [#allocation7], 0 }
   0x4   :  { %16 = vsyncpa [#allocation15], 0  ;;  %s2906_s21 = smov [#allocation8]  }
   0x5   :  { %s34_s22 = sshll.u32 %s2906_s21, 4  ;;  %s35_s22 = int_to_ptr.vmem [resolvable:$true] %s34_s22 }
   0x6   :  { %s2784_s23 = scalar_lea.vmem %s35_s22, 512  ;;  %p2789_p1 = scmp.lt.s32.totalorder %s35_s22, %s35_s22 }
   0x7   :  { %p2785_p0 = scmp.ne.s32.totalorder %s35_s22, %s2784_s23  ;;  %p2790_p2 = scmp.lt.s32.totalorder %s2784_s23, %s2784_s23 }
   0x9   :  { %p2791_p3 = por %p2790_p2, %p2789_p1 }
   0xb   :  { %p2792_p4 = pnand %p2791_p3, %p2785_p0 }
   0xd   :  { %2795 = shalt.err (!%p2792_p4)
}
   0xe   :  { %s2907_s24 = smov 256   ;;  %s2908_s25 = smov 16  }
   0xf   :  { %40 = dma.hbm_to_vmem [thread:$0]  %s3480_s1, 512, %s35_s22, [#allocation9], %s2907_s24, %s2907_s24, %s2908_s25  }
  0x10   :  { %s2909_s28 = smov [#allocation5]  }
  0x11   :  { %s22_s29 = sshll.u32 %s2909_s28, 4  ;;  %s23_s29 = int_to_ptr.vmem [resolvable:$true] %s22_s29 }
  0x12   :  { %s2804_s30 = scalar_lea.vmem %s23_s29, 256  ;;  %p2809_p6 = scmp.lt.s32.totalorder %s23_s29, %s23_s29 }
  0x13   :  { %p2805_p5 = scmp.ne.s32.totalorder %s23_s29, %s2804_s30  ;;  %p2810_p7 = scmp.lt.s32.totalorder %s2804_s30, %s2804_s30 }
  0x15   :  { %p2811_p8 = por %p2810_p7, %p2809_p6 }
  0x17   :  { %p2812_p9 = pnand %p2811_p8, %p2805_p5 }
  0x19   :  { %2815 = shalt.err (!%p2812_p9)
}
  0x1a   :  { %s2910_s7 = smov 128   ;;  %s2911_s8 = smov 8  }
  0x1b   :  { %28 = dma.hbm_to_vmem [thread:$0]  %s3479_s0, 256, %s23_s29, [#allocation6], %s2910_s7, %s2910_s7, %s2911_s8  }
  0x1c   :  { %s2912_s11 = smov [#allocation10]   ;;  %s2913_s13 = smov [#allocation11]  }
  0x1d   :  { %s48_s12 = sshll.u32 %s2912_s11, 4  ;;  %s60_s1 = sshll.u32 %s2913_s13, 4  ;;  %s49_s12 = int_to_ptr.vmem [resolvable:$true] %s48_s12  ;;  %s61_s1 = int_to_ptr.vmem [resolvable:$true] %s60_s1 }
  0x1e   :  { %s2824_s14 = scalar_lea.vmem %s49_s12, 512  ;;  %p2829_p11 = scmp.lt.s32.totalorder %s49_s12, %s49_s12 }
  0x1f   :  { %p2825_p10 = scmp.ne.s32.totalorder %s49_s12, %s2824_s14  ;;  %p2830_p12 = scmp.lt.s32.totalorder %s2824_s14, %s2824_s14 }
  0x21   :  { %p2831_p13 = por %p2830_p12, %p2829_p11 }
  0x23   :  { %p2832_p0 = pnand %p2831_p13, %p2825_p10 }
  0x25   :  { %2835 = shalt.err (!%p2832_p0)
}
  0x26   :  { %54 = dma.hbm_to_vmem [thread:$0]  %s3482_s3, 512, %s49_s12, [#allocation9], %s2910_s7, %s2910_s7, %s2911_s8  }
  0x27   :  { %s2844_s17 = scalar_lea.vmem %s61_s1, 512  ;;  %p2849_p2 = scmp.lt.s32.totalorder %s61_s1, %s61_s1 }
  0x28   :  { %p2845_p1 = scmp.ne.s32.totalorder %s61_s1, %s2844_s17  ;;  %p2850_p3 = scmp.lt.s32.totalorder %s2844_s17, %s2844_s17 }
  0x2a   :  { %p2851_p4 = por %p2850_p3, %p2849_p2 }
  0x2c   :  { %p2852_p5 = pnand %p2851_p4, %p2845_p1 }
  0x2e   :  { %2855 = shalt.err (!%p2852_p5)
}
  0x2f   :  { %66 = dma.hbm_to_vmem [thread:$0]  %s3483_s4, 512, %s61_s1, [#allocation12], %s2910_s7, %s2910_s7, %s2911_s8  }
  0x30   :  { %2896 = dma.done.wait [#allocation6], 256  }
  0x31   :  { %2897 = vsyncadd [#allocation6], 4294967040 }
  0x32   :  { %2898 = dma.done.wait [#allocation9], 1024  }
  0x33   :  { %2899 = vsyncadd [#allocation9], 4294966272 }
  0x34   :  { %2900 = dma.done.wait [#allocation12], 512  }
  0x35   :  { %2901 = vsyncadd [#allocation12], 4294966784  ;;  %v2914_v0 = vmov 0.0   ;;  %vm2915_vm0 = vmmov 0   ;;  %v84_v1 = vld [vmem:[#allocation8 + $0x18] sm:$0xff]  ;;  %v83_v2 = vld [vmem:[#allocation8 + $0x10] sm:$0xff]  ;;  %v87_v15 = vlaneseq }
  0x36   :  { %168 = vmatprep.mubr.f32.mxu0 %v2914_v0  ;;  %2448 = vmatprep.subr.mxu1 %v2914_v0  ;;  %v82_v3 = vld [vmem:[#allocation8 + $0x8] sm:$0xff]  ;;  %v81_v4 = vld [vmem:[#allocation8] sm:$0xff]  ;;  %v2971_v5 = vld [vmem:[#allocation10 + $0x18] sm:$0xff]  ;;  %vm97_vm1 = vcmask 130048   ;;  %s2917_s19 = smov 32   ;;  %vm193_vm2 = vcmask 261120  }
  0x37   :  { %2456 = vmatprep.mubr.msk.f32.mxu1 %vm2915_vm0, %v2914_v0  ;;  %132 = vmatprep.subr.mxu0 %v84_v1  ;;  %v79_v6 = vld [vmem:[#allocation5] sm:$0xff]  ;;  %v2977_v8 = vld [vmem:[#allocation11 + $0x18] sm:$0xff]  ;;  %v2982_v9 = vld [vmem:[#allocation10 + $0x8] sm:$0xff]  ;;  %v3032_v16 = vshrl.u32 %v87_v15, 7  ;;  %vm396_vm3 = vcmask 254976   ;;  %vm621_vm4 = vcmask 257026  }
  0x38   :  { %133 = vmatpush1.msra.mxu0 %v83_v2  ;;  %2449 = vmatpush3.msra.mxu1 %v2971_v5  ;;  %v2974_v7 = vld [vmem:[#allocation10 + $0x10] sm:$0xff]  ;;  %v80_v11 = vld [vmem:[#allocation5 + $0x8] sm:$0xff]  ;;  %v2990_v12 = vld [vmem:[#allocation10] sm:$0xff]  ;;  %vm628_vm5 = vcmask 259076   ;;  %vm403_vm6 = vcmask 261126   ;;  %vm2104_vm7 = vcmask 1041409  }
  0x39   :  { %134 = vmatprep.subr.mxu0 %v82_v3  ;;  %2450 = vmatprep.subr.mxu1 %v2914_v0  ;;  %v2984_v10 = vld [vmem:[#allocation11 + $0x10] sm:$0xff]  ;;  %v2994_v13 = vld [vmem:[#allocation11 + $0x8] sm:$0xff]  ;;  %v3000_v14 = vld [vmem:[#allocation11] sm:$0xff]  ;;  %v89_v17 = vsub.s32 0, %v3032_v16  ;;  %v93_v19 = vsub.s32 1, %v3032_v16  ;;  %vm2106_vm8 = vcmask 1042434  }
  0x3a   :  { %135 = vmatpush1.msra.mxu0 %v81_v4  ;;  %2451 = vmatpush3.msra.mxu1 %v2974_v7  ;;  %v85_v18 = vld [vmem:[%s3481_s2] sm:$0x3]  ;;  %s2916_s2 = smov 64   ;;  %vm2108_vm9 = vcmask 1043459   ;;  %vm2110_vm10 = vcmask 1044484   ;;  %vm2112_vm11 = vcmask 1045509  }
  0x3b   :  { %2336 = vmatmul.mubr.msk.f32.vlgmr.msra.gmra.mxu0 %vm97_vm1, %v79_v6  ;;  %2459 = vmatprep.subr.mxu0 %v2914_v0  ;;  %v90_v20 = vrot.slane %v85_v18, %v89_v17  ;;  %v94_v21 = vrot.slane %v85_v18, %v93_v19  ;;  %vm2114_vm12 = vcmask 1046534   ;;  %vm2116_vm13 = vcmask 1047559   ;;  %s2918_s20 = smov [#allocation14]  }
  0x3c   :  { %174 = vmatprep.mubr.f32.mxu0 %v2914_v0  ;;  %2460 = vmatpush3.msra.mxu0 %v2977_v8  ;;  %vm2151_vm14 = vcmask 58368   ;;  %s2321_s21 = sshll.u32 %s2918_s20, 4  ;;  %s2322_s21 = int_to_ptr.vmem [resolvable:$true] %s2321_s21 }
  0x3d   :  { %2452 = vmatprep.subr.mxu1 %v2914_v0  ;;  %2461 = vmatprep.subr.mxu0 %v2914_v0  ;;  %s2856_s22 = scalar_lea.vmem %s2322_s21, 32  ;;  %p2861_p7 = scmp.lt.s32.totalorder %s2322_s21, %s2322_s21 }
  0x3e   :  { %2453 = vmatpush3.msra.mxu1 %v2982_v9  ;;  %2462 = vmatpush3.msra.mxu0 %v2984_v10  ;;  %p2857_p6 = scmp.ne.s32.totalorder %s2322_s21, %s2856_s22  ;;  %p2862_p8 = scmp.lt.s32.totalorder %s2856_s22, %s2856_s22 }
  0x3f   :  { %2337 = vmatmul.mubr.msk.f32.gmra.mxu0 %vm97_vm1, %v80_v11  ;;  %2454 = vmatprep.subr.mxu1 %v2914_v0 }
  0x40   :  { %2463 = vmatprep.subr.mxu0 %v2914_v0  ;;  %2455 = vmatpush3.msra.mxu1 %v2990_v12  ;;  %p2863_p9 = por %p2862_p8, %p2861_p7 }
  0x41   :  { %2464 = vmatpush3.msra.mxu0 %v2994_v13  ;;  %2457 = vmatmul.mubr.f32.vlgmr.msra.gmra.mxu1 %v2914_v0 }
  0x42   :  { %2465 = vmatprep.subr.mxu0 %v2914_v0  ;;  %2467 = vmatprep.mubr.msk.f32.mxu0 %vm2915_vm0, %v2914_v0  ;;  %p2864_p10 = pnand %p2863_p9, %p2857_p6 }
  0x43   :  { %2466 = vmatpush3.msra.mxu0 %v3000_v14  ;;  %2470 = vmatprep.subr.mxu1 %v2914_v0 }
  0x44   :  { %2468 = vmatmul.mubr.f32.vlgmr.msra.gmra.mxu0 %v2914_v0  ;;  %2481 = vmatprep.subr.mxu0 %v2914_v0 }
  0x45   :  { %2482 = vmatpush3.msra.mxu0 %v2977_v8  ;;  %2471 = vmatpush3.msra.mxu1 %v2971_v5 }
  0x46   :  { %2483 = vmatprep.subr.mxu0 %v2914_v0  ;;  %2472 = vmatprep.subr.mxu1 %v2914_v0 }
  0x47   :  { %2484 = vmatpush3.msra.mxu0 %v2984_v10  ;;  %2473 = vmatpush3.msra.mxu1 %v2974_v7 }
  0x48   :  { %2485 = vmatprep.subr.mxu0 %v2914_v0  ;;  %2474 = vmatprep.subr.mxu1 %v2914_v0 }
  0x49   :  { %2486 = vmatpush3.msra.mxu0 %v2994_v13  ;;  %2475 = vmatpush3.msra.mxu1 %v2982_v9 }
  0x4a   :  { %2487 = vmatprep.subr.mxu0 %v2914_v0  ;;  %2489 = vmatprep.mubr.msk.f32.mxu0 %vm2915_vm0, %v2914_v0 }
  0x4b   :  { %2488 = vmatpush3.msra.mxu0 %v3000_v14  ;;  %2476 = vmatprep.subr.mxu1 %v2914_v0 }
  0x4c   :  { %2477 = vmatpush3.msra.mxu1 %v2990_v12  ;;  %2478 = vmatprep.mubr.msk.f32.mxu1 %vm2915_vm0, %v2914_v0 }
  0x4d   :  { %2503 = vmatprep.subr.mxu0 %v2914_v0  ;;  %2492 = vmatprep.subr.mxu1 %v2914_v0 }
  0xfb   :  { %v170_v22 = vpop.f32.mrf.mxu0 }
  0xfc   :  { %v171_v23 = vadd.f32 %v170_v22, %v90_v20 }
  0xfd   :  { %v172_v24 = vpop.f32.mrf.mxu0 }
  0xfe   :  { %181 = vst [vmem:[#allocation2 + $0x10] sm:$0xff] %v171_v23  ;;  %v173_v25 = vadd.f32 %v172_v24, %v94_v21 }
  0xff   :  { %v176_v26 = vpop.f32.mrf.mxu0 }
 0x100   :  { %182 = vst [vmem:[#allocation2] sm:$0xff] %v173_v25  ;;  %v177_v27 = vadd.f32 %v176_v26, %v90_v20 }
 0x101   :  { %v178_v28 = vpop.f32.mrf.mxu0  ;;  %v263_v29 = vpop.f32.mrf.mxu1 }
 0x102   :  { %183 = vst [vmem:[#allocation2 + $0x18] sm:$0xff] %v177_v27  ;;  %v179_v30 = vadd.f32 %v178_v28, %v94_v21 }
 0x103   :  { %v2458_v31 = vpop.f32.mrf.mxu1 }
 0x104   :  { %184 = vst [vmem:[#allocation2 + $0x8] sm:$0xff] %v179_v30  ;;  %v333_v32 = vpop.f32.mrf.mxu0 }
 0x105   :  { %v341_v34 = vrot.slane %v333_v32, 2  ;;  %v337_v35 = vld [vmem:[#allocation2 + $0x10] sm:$0x3]  ;;  %v552_v24 = vld [vmem:[#allocation2 + $0x10] sm:$0xc] }
 0x106   :  { %v2469_v33 = vpop.f32.mrf.mxu0  ;;  %v338_v38 = vadd.f32 %v337_v35, %v263_v29 }
 0x108   :  { %v2338_v42 = vmul.f32 -1.442695, %v338_v38 }
 0x10b   :  { %v339_v36 = vld [vmem:[#allocation2 + $0x8] sm:$0xc0]  ;;  %v557_v18 = vld [vmem:[#allocation2 + $0x8] sm:$0x30] }
 0x10c   :  { %v343_v37 = vadd.f32 %v341_v34, %v339_v36 }
 0x10e   :  { %2638 = vtanh.f32 %v343_v37  ;;  %v2339_v41 = vmul.f32 -1.442695, %v343_v37 }
 0x10f   :  { %2640 = vtanh.f32 %v338_v38 }
 0x110   :  { %2642 = vpow2.f32 %v2339_v41 }
 0x111   :  { %2644 = vpow2.f32 %v2338_v42 }
 0x11b   :  { %v2639_v39 = vpop.eup %2638 }
 0x11c   :  { %377 = vrot.lane.b32.xlu0 %v2639_v39, %s2916_s2  ;;  %v2641_v40 = vpop.eup %2640 }
 0x11d   :  { %v2643_v43 = vpop.eup %2642 }
 0x11e   :  { %v371_v44 = vadd.f32 1.0, %v2643_v43  ;;  %v2645_v45 = vpop.eup %2644 }
 0x11f   :  { %v347_v46 = vadd.f32 1.0, %v2645_v45 }
 0x120   :  { %353 = vrot.lane.b32.xlu0 %v2641_v40, %s2916_s2  ;;  %2646 = vrcp.f32 %v371_v44 }
 0x121   :  { %2648 = vrcp.f32 %v347_v46 }
 0x12d   :  { %v2647_v47 = vpop.eup %2646 }
 0x12e   :  { %v2649_v50 = vpop.eup %2648  ;;  %v375_v53 = vmul.f32 0.0, %v2647_v47 }
 0x12f   :  { %v351_v56 = vmul.f32 0.0, %v2649_v50 }
 0x18e   :  { %v378_v48 = vpop.permute.xlu0 %377 }
 0x18f   :  { %v380_v49 = vmul.f32 %v2647_v47, %v378_v48 }
 0x191   :  { %382 = vrot.lane.b32.xlu1 %v380_v49, %s2917_s19 }
 0x192   :  { %v354_v51 = vpop.permute.xlu0 %353 }
 0x193   :  { %v356_v52 = vmul.f32 %v2649_v50, %v354_v51 }
 0x195   :  { %358 = vrot.lane.b32.xlu1 %v356_v52, %s2917_s19 }
 0x203   :  { %v383_v54 = vpop.permute.xlu1 %382 }
 0x204   :  { %v3047_v55 = vadd.f32 %v383_v54, %v375_v53 }
 0x206   :  { %2650 = vtanh.f32 %v3047_v55  ;;  %v597_v41 = vrot.slane %v3047_v55, 2 }
 0x207   :  { %v359_v57 = vpop.permute.xlu1 %358 }
 0x208   :  { %v3050_v58 = vadd.f32 %v359_v57, %v351_v56 }
 0x20a   :  { %2652 = vtanh.f32 %v3050_v58  ;;  %v570_v43 = vrot.slane %v3050_v58, 6 }
 0x213   :  { %v2651_v59 = vpop.eup %2650 }
 0x214   :  { %388 = vrot.lane.b32.xlu0 %v2651_v59, %s2916_s2 }
 0x217   :  { %v2653_v60 = vpop.eup %2652 }
 0x218   :  { %364 = vrot.lane.b32.xlu1 %v2653_v60, %s2916_s2 }
 0x286   :  { %v389_v61 = vpop.permute.xlu0 %388 }
 0x287   :  { %v3055_v62 = vmul.f32 %v2647_v47, %v389_v61  ;;  %v785_v61 = vld [vmem:[#allocation2 + $0x8] sm:$0xc] }
 0x289   :  { %v477_v63 = vrot.slane %v3055_v62, 6 }
 0x28a   :  { %v365_v1 = vpop.permute.xlu1 %364 }
 0x28b   :  { %v367_v2 = vmul.f32 %v2649_v50, %v365_v1  ;;  %478 = vrot.lane.b32.xlu0 %v477_v63, %s2917_s19 }
 0x28d   :  { %393 = vrot.lane.b32.xlu1 %v367_v2, %s2917_s19 }
 0x2fd   :  { %v479_v3 = vpop.permute.xlu0 %478 }
 0x2fe   :  { %2490 = vmatmul.mubr.msk.f32.vlgmr.msra.gmra.mxu0 %vm193_vm2, %v479_v3 }
 0x2ff   :  { %v394_v4 = vpop.permute.xlu1 %393  ;;  %2504 = vmatpush3.msra.mxu0 %v2977_v8  ;;  %2511 = vmatprep.mubr.msk.f32.mxu0 %vm2915_vm0, %v2914_v0 }
 0x300   :  { %397 = vst.msk [vmem:[#allocation3] sm:$0x3] %vm396_vm3, %v394_v4  ;;  %2479 = vmatmul.mubr.msk.f32.vlgmr.msra.gmra.mxu1 %vm193_vm2, %v394_v4  ;;  %2505 = vmatprep.subr.mxu0 %v2914_v0  ;;  %v780_v4 = vld [vmem:[#allocation2 + $0x10] sm:$0x30] }
 0x301   :  { %2493 = vmatpush3.msra.mxu1 %v2971_v5  ;;  %2506 = vmatpush3.msra.mxu0 %v2984_v10 }
 0x302   :  { %2494 = vmatprep.subr.mxu1 %v2914_v0  ;;  %2507 = vmatprep.subr.mxu0 %v2914_v0 }
 0x303   :  { %2495 = vmatpush3.msra.mxu1 %v2974_v7  ;;  %2508 = vmatpush3.msra.mxu0 %v2994_v13 }
 0x304   :  { %2496 = vmatprep.subr.mxu1 %v2914_v0  ;;  %2509 = vmatprep.subr.mxu0 %v2914_v0 }
 0x305   :  { %2510 = vmatpush3.msra.mxu0 %v3000_v14  ;;  %2497 = vmatpush3.msra.mxu1 %v2982_v9 }
 0x306   :  { %2498 = vmatprep.subr.mxu1 %v2914_v0  ;;  %2500 = vmatprep.mubr.msk.f32.mxu1 %vm2915_vm0, %v2914_v0 }
 0x307   :  { %2499 = vmatpush3.msra.mxu1 %v2990_v12  ;;  %2525 = vmatprep.subr.mxu0 %v2914_v0 }
 0x308   :  { %2514 = vmatprep.subr.mxu1 %v2914_v0 }
 0x3be   :  { %v548_v6 = vpop.f32.mrf.mxu0 }
 0x3bf   :  { %v559_v11 = vrot.slane %v548_v6, 4 }
 0x3c0   :  { %v473_v20 = vpop.f32.mrf.mxu1  ;;  %v2491_v21 = vpop.f32.mrf.mxu0 }
 0x3c1   :  { %v561_v22 = vadd.f32 %v559_v11, %v557_v18  ;;  %v554_v23 = vrot.slane %v473_v20, 6 }
 0x3c2   :  { %v2480_v25 = vpop.f32.mrf.mxu1 }
 0x3c3   :  { %2654 = vtanh.f32 %v561_v22  ;;  %v556_v26 = vadd.f32 %v554_v23, %v552_v24  ;;  %v2343_v29 = vmul.f32 -1.442695, %v561_v22 }
 0x3c5   :  { %2656 = vtanh.f32 %v556_v26  ;;  %v2342_v30 = vmul.f32 -1.442695, %v556_v26 }
 0x3c6   :  { %2658 = vpow2.f32 %v2343_v29 }
 0x3c7   :  { %2660 = vpow2.f32 %v2342_v30 }
 0x3d0   :  { %v2655_v27 = vpop.eup %2654 }
 0x3d1   :  { %601 = vrot.lane.b32.xlu0 %v2655_v27, %s2916_s2 }
 0x3d2   :  { %v2657_v28 = vpop.eup %2656 }
 0x3d3   :  { %574 = vrot.lane.b32.xlu1 %v2657_v28, %s2916_s2  ;;  %v2659_v31 = vpop.eup %2658 }
 0x3d4   :  { %v2661_v32 = vpop.eup %2660  ;;  %v592_v33 = vadd.f32 1.0, %v2659_v31 }
 0x3d5   :  { %v565_v34 = vadd.f32 1.0, %v2661_v32 }
 0x3d6   :  { %2662 = vrcp.f32 %v592_v33 }
 0x3d7   :  { %2664 = vrcp.f32 %v565_v34 }
 0x3e3   :  { %v2663_v35 = vpop.eup %2662 }
 0x3e4   :  { %v2665_v38 = vpop.eup %2664  ;;  %v599_v42 = vmul.f32 %v2663_v35, %v597_v41 }
 0x3e5   :  { %v572_v46 = vmul.f32 %v2665_v38, %v570_v43 }
 0x443   :  { %v602_v36 = vpop.permute.xlu0 %601 }
 0x444   :  { %v604_v37 = vmul.f32 %v2663_v35, %v602_v36 }
 0x445   :  { %v575_v39 = vpop.permute.xlu1 %574 }
 0x446   :  { %606 = vrot.lane.b32.xlu0 %v604_v37, %s2917_s19  ;;  %v577_v40 = vmul.f32 %v2665_v38, %v575_v39 }
 0x448   :  { %579 = vrot.lane.b32.xlu1 %v577_v40, %s2917_s19 }
 0x4b8   :  { %v607_v44 = vpop.permute.xlu0 %606 }
 0x4b9   :  { %v3089_v45 = vadd.f32 %v607_v44, %v599_v42 }
 0x4ba   :  { %v580_v47 = vpop.permute.xlu1 %579 }
 0x4bb   :  { %2666 = vtanh.f32 %v3089_v45  ;;  %v3092_v48 = vadd.f32 %v580_v47, %v572_v46  ;;  %v825_v33 = vrot.slane %v3089_v45, 2 }
 0x4bd   :  { %2668 = vtanh.f32 %v3092_v48 }
 0x4c8   :  { %v2667_v49 = vpop.eup %2666 }
 0x4c9   :  { %612 = vrot.lane.b32.xlu0 %v2667_v49, %s2916_s2 }
 0x4ca   :  { %v2669_v50 = vpop.eup %2668 }
 0x4cb   :  { %585 = vrot.lane.b32.xlu1 %v2669_v50, %s2916_s2 }
 0x53b   :  { %v613_v51 = vpop.permute.xlu0 %612 }
 0x53c   :  { %v3097_v52 = vmul.f32 %v2663_v35, %v613_v51  ;;  %v798_v35 = vrot.slane %v3092_v48, 6 }
 0x53d   :  { %v586_v54 = vpop.permute.xlu1 %585 }
 0x53e   :  { %v705_v53 = vrot.slane %v3097_v52, 4  ;;  %v3100_v55 = vmul.f32 %v2665_v38, %v586_v54 }
 0x540   :  { %706 = vrot.lane.b32.xlu0 %v705_v53, %s2917_s19  ;;  %v630_v56 = vrot.slane %v3100_v55, 2  ;;  %v1011_v53 = vld [vmem:[#allocation2 + $0x8] sm:$0x3] }
 0x542   :  { %631 = vrot.lane.b32.xlu1 %v630_v56, %s2917_s19 }
 0x5b2   :  { %v707_v57 = vpop.permute.xlu0 %706 }
 0x5b3   :  { %2512 = vmatmul.mubr.msk.f32.vlgmr.msra.gmra.mxu0 %vm193_vm2, %v707_v57 }
 0x5b4   :  { %2526 = vmatpush3.msra.mxu0 %v2977_v8  ;;  %2533 = vmatprep.mubr.msk.f32.mxu0 %vm2915_vm0, %v2914_v0  ;;  %v632_v58 = vpop.permute.xlu1 %631 }
 0x5b5   :  { %2527 = vmatprep.subr.mxu0 %v2914_v0  ;;  %2501 = vmatmul.mubr.msk.f32.vlgmr.msra.gmra.mxu1 %vm193_vm2, %v632_v58 }
 0x5b6   :  { %2528 = vmatpush3.msra.mxu0 %v2984_v10  ;;  %2515 = vmatpush3.msra.mxu1 %v2971_v5 }
 0x5b7   :  { %2529 = vmatprep.subr.mxu0 %v2914_v0  ;;  %2516 = vmatprep.subr.mxu1 %v2914_v0 }
 0x5b8   :  { %2530 = vmatpush3.msra.mxu0 %v2994_v13  ;;  %2517 = vmatpush3.msra.mxu1 %v2974_v7 }
 0x5b9   :  { %2531 = vmatprep.subr.mxu0 %v2914_v0  ;;  %2518 = vmatprep.subr.mxu1 %v2914_v0 }
 0x5ba   :  { %2532 = vmatpush3.msra.mxu0 %v3000_v14  ;;  %2519 = vmatpush3.msra.mxu1 %v2982_v9 }
 0x5bb   :  { %2522 = vmatprep.mubr.msk.f32.mxu1 %vm2915_vm0, %v2914_v0  ;;  %2520 = vmatprep.subr.mxu1 %v2914_v0 }
 0x5bc   :  { %2547 = vmatprep.subr.mxu0 %v2914_v0  ;;  %2521 = vmatpush3.msra.mxu1 %v2990_v12 }
 0x5bd   :  { %2536 = vmatprep.subr.mxu1 %v2914_v0 }
 0x673   :  { %v776_v59 = vpop.f32.mrf.mxu0 }
 0x674   :  { %v787_v60 = vrot.slane %v776_v59, 6  ;;  %v1006_v59 = vld [vmem:[#allocation2 + $0x10] sm:$0xc0] }
 0x675   :  { %v2513_v63 = vpop.f32.mrf.mxu0  ;;  %v701_v2 = vpop.f32.mrf.mxu1 }
 0x676   :  { %v789_v1 = vadd.f32 %v787_v60, %v785_v61  ;;  %v782_v3 = vrot.slane %v701_v2, 4 }
 0x677   :  { %v2502_v6 = vpop.f32.mrf.mxu1 }
 0x678   :  { %2670 = vtanh.f32 %v789_v1  ;;  %v784_v11 = vadd.f32 %v782_v3, %v780_v4  ;;  %v2347_v21 = vmul.f32 -1.442695, %v789_v1 }
 0x67a   :  { %2672 = vtanh.f32 %v784_v11  ;;  %v2346_v22 = vmul.f32 -1.442695, %v784_v11 }
 0x67b   :  { %2674 = vpow2.f32 %v2347_v21 }
 0x67c   :  { %2676 = vpow2.f32 %v2346_v22 }
 0x685   :  { %v2671_v18 = vpop.eup %2670 }
 0x686   :  { %829 = vrot.lane.b32.xlu0 %v2671_v18, %s2916_s2 }
 0x687   :  { %v2673_v20 = vpop.eup %2672 }
 0x688   :  { %802 = vrot.lane.b32.xlu1 %v2673_v20, %s2916_s2  ;;  %v2675_v23 = vpop.eup %2674 }
 0x689   :  { %v2677_v24 = vpop.eup %2676  ;;  %v820_v25 = vadd.f32 1.0, %v2675_v23 }
 0x68a   :  { %v793_v26 = vadd.f32 1.0, %v2677_v24 }
 0x68b   :  { %2678 = vrcp.f32 %v820_v25 }
 0x68c   :  { %2680 = vrcp.f32 %v793_v26 }
 0x698   :  { %v2679_v27 = vpop.eup %2678 }
 0x699   :  { %v2681_v30 = vpop.eup %2680  ;;  %v827_v34 = vmul.f32 %v2679_v27, %v825_v33 }
 0x69a   :  { %v800_v38 = vmul.f32 %v2681_v30, %v798_v35 }
 0x6f8   :  { %v830_v28 = vpop.permute.xlu0 %829 }
 0x6f9   :  { %v832_v29 = vmul.f32 %v2679_v27, %v830_v28 }
 0x6fa   :  { %v803_v31 = vpop.permute.xlu1 %802 }
 0x6fb   :  { %834 = vrot.lane.b32.xlu0 %v832_v29, %s2917_s19  ;;  %v805_v32 = vmul.f32 %v2681_v30, %v803_v31 }
 0x6fd   :  { %807 = vrot.lane.b32.xlu1 %v805_v32, %s2917_s19 }
 0x76d   :  { %v835_v36 = vpop.permute.xlu0 %834 }
 0x76e   :  { %v3133_v37 = vadd.f32 %v835_v36, %v827_v34 }
 0x76f   :  { %v808_v39 = vpop.permute.xlu1 %807 }
 0x770   :  { %2682 = vtanh.f32 %v3133_v37  ;;  %v3136_v40 = vadd.f32 %v808_v39, %v800_v38  ;;  %v1048_v26 = vrot.slane %v3133_v37, 2 }
 0x772   :  { %2684 = vtanh.f32 %v3136_v40 }
 0x77d   :  { %v2683_v41 = vpop.eup %2682 }
 0x77e   :  { %840 = vrot.lane.b32.xlu0 %v2683_v41, %s2916_s2 }
 0x77f   :  { %v2685_v42 = vpop.eup %2684 }
 0x780   :  { %813 = vrot.lane.b32.xlu1 %v2685_v42, %s2916_s2 }
 0x7f0   :  { %v841_v43 = vpop.permute.xlu0 %840 }
 0x7f1   :  { %v3141_v44 = vmul.f32 %v2679_v27, %v841_v43 }
 0x7f2   :  { %v814_v46 = vpop.permute.xlu1 %813 }
 0x7f3   :  { %v931_v45 = vrot.slane %v3141_v44, 2  ;;  %v3144_v47 = vmul.f32 %v2681_v30, %v814_v46  ;;  %v1021_v30 = vrot.slane %v3136_v40, 6  ;;  %v1228_v46 = vld [vmem:[#allocation2] sm:$0xc0] }
 0x7f5   :  { %932 = vrot.lane.b32.xlu0 %v931_v45, %s2917_s19  ;;  %v856_v48 = vrot.slane %v3144_v47, 4 }
 0x7f7   :  { %857 = vrot.lane.b32.xlu1 %v856_v48, %s2917_s19 }
 0x867   :  { %v933_v49 = vpop.permute.xlu0 %932 }
 0x868   :  { %2534 = vmatmul.mubr.msk.f32.vlgmr.msra.gmra.mxu0 %vm193_vm2, %v933_v49 }
 0x869   :  { %2548 = vmatpush3.msra.mxu0 %v2977_v8  ;;  %2555 = vmatprep.mubr.msk.f32.mxu0 %vm2915_vm0, %v2914_v0  ;;  %v858_v50 = vpop.permute.xlu1 %857 }
 0x86a   :  { %2549 = vmatprep.subr.mxu0 %v2914_v0  ;;  %2523 = vmatmul.mubr.msk.f32.vlgmr.msra.gmra.mxu1 %vm193_vm2, %v858_v50 }
 0x86b   :  { %2550 = vmatpush3.msra.mxu0 %v2984_v10  ;;  %2537 = vmatpush3.msra.mxu1 %v2971_v5 }
 0x86c   :  { %2551 = vmatprep.subr.mxu0 %v2914_v0  ;;  %2538 = vmatprep.subr.mxu1 %v2914_v0 }
 0x86d   :  { %2552 = vmatpush3.msra.mxu0 %v2994_v13  ;;  %2539 = vmatpush3.msra.mxu1 %v2974_v7 }
 0x86e   :  { %2553 = vmatprep.subr.mxu0 %v2914_v0  ;;  %2540 = vmatprep.subr.mxu1 %v2914_v0 }
 0x86f   :  { %2554 = vmatpush3.msra.mxu0 %v3000_v14  ;;  %2541 = vmatpush3.msra.mxu1 %v2982_v9 }
 0x870   :  { %2544 = vmatprep.mubr.msk.f32.mxu1 %vm2915_vm0, %v2914_v0  ;;  %2542 = vmatprep.subr.mxu1 %v2914_v0 }
 0x871   :  { %2569 = vmatprep.subr.mxu0 %v2914_v0  ;;  %2543 = vmatpush3.msra.mxu1 %v2990_v12 }
 0x872   :  { %2558 = vmatprep.subr.mxu1 %v2914_v0 }
 0x928   :  { %v1002_v51 = vpop.f32.mrf.mxu0 }
 0x929   :  { %v1012_v54 = vadd.f32 %v1011_v53, %v1002_v51  ;;  %v1226_v51 = vld [vmem:[#allocation2 + $0x18] sm:$0x3] }
 0x92a   :  { %v2535_v56 = vpop.f32.mrf.mxu0  ;;  %v927_v57 = vpop.f32.mrf.mxu1 }
 0x92b   :  { %2686 = vtanh.f32 %v1012_v54  ;;  %v1008_v58 = vrot.slane %v927_v57, 2  ;;  %v2351_v2 = vmul.f32 -1.442695, %v1012_v54 }
 0x92c   :  { %v2524_v60 = vpop.f32.mrf.mxu1 }
 0x92d   :  { %v1010_v61 = vadd.f32 %v1008_v58, %v1006_v59 }
 0x92f   :  { %2688 = vtanh.f32 %v1010_v61  ;;  %v2350_v3 = vmul.f32 -1.442695, %v1010_v61 }
 0x930   :  { %2690 = vpow2.f32 %v2351_v2 }
 0x931   :  { %2692 = vpow2.f32 %v2350_v3 }
 0x938   :  { %v2687_v63 = vpop.eup %2686 }
 0x939   :  { %1052 = vrot.lane.b32.xlu0 %v2687_v63, %s2916_s2 }
 0x93c   :  { %v2689_v1 = vpop.eup %2688 }
 0x93d   :  { %1025 = vrot.lane.b32.xlu1 %v2689_v1, %s2916_s2  ;;  %v2691_v4 = vpop.eup %2690 }
 0x93e   :  { %v1043_v6 = vadd.f32 1.0, %v2691_v4  ;;  %v2693_v11 = vpop.eup %2692 }
 0x93f   :  { %v1016_v18 = vadd.f32 1.0, %v2693_v11 }
 0x940   :  { %2694 = vrcp.f32 %v1043_v6 }
 0x941   :  { %2696 = vrcp.f32 %v1016_v18 }
 0x94d   :  { %v2695_v20 = vpop.eup %2694 }
 0x94e   :  { %v2697_v23 = vpop.eup %2696  ;;  %v1050_v27 = vmul.f32 %v2695_v20, %v1048_v26 }
 0x94f   :  { %v1023_v31 = vmul.f32 %v2697_v23, %v1021_v30 }
 0x9ab   :  { %v1053_v21 = vpop.permute.xlu0 %1052 }
 0x9ac   :  { %v1055_v22 = vmul.f32 %v2695_v20, %v1053_v21 }
 0x9ae   :  { %1057 = vrot.lane.b32.xlu0 %v1055_v22, %s2917_s19 }
 0x9af   :  { %v1026_v24 = vpop.permute.xlu1 %1025 }
 0x9b0   :  { %v1028_v25 = vmul.f32 %v2697_v23, %v1026_v24 }
 0x9b2   :  { %1030 = vrot.lane.b32.xlu1 %v1028_v25, %s2917_s19 }
 0xa20   :  { %v1058_v28 = vpop.permute.xlu0 %1057 }
 0xa21   :  { %v3176_v29 = vadd.f32 %v1058_v28, %v1050_v27 }
 0xa23   :  { %2698 = vtanh.f32 %v3176_v29 }
 0xa24   :  { %v1031_v32 = vpop.permute.xlu1 %1030 }
 0xa25   :  { %v3180_v33 = vadd.f32 %v1031_v32, %v1023_v31 }
 0xa27   :  { %2700 = vtanh.f32 %v3180_v33  ;;  %v1241_v24 = vrot.slane %v3180_v33, 6 }
 0xa30   :  { %v2699_v34 = vpop.eup %2698 }
 0xa31   :  { %1063 = vrot.lane.b32.xlu0 %v2699_v34, %s2916_s2 }
 0xa34   :  { %v2701_v35 = vpop.eup %2700 }
 0xa35   :  { %1036 = vrot.lane.b32.xlu1 %v2701_v35, %s2916_s2 }
 0xaa3   :  { %v1064_v36 = vpop.permute.xlu0 %1063 }
 0xaa4   :  { %v1066_v37 = vmul.f32 %v2695_v20, %v1064_v36  ;;  %v1268_v20 = vrot.slane %v3176_v29, 2 }
 0xaa6   :  { %1074 = vrot.lane.b32.xlu0 %v1066_v37, %s2917_s19 }
 0xaa7   :  { %v1037_v38 = vpop.permute.xlu1 %1036 }
 0xaa8   :  { %v3186_v39 = vmul.f32 %v2697_v23, %v1037_v38 }
 0xaaa   :  { %v1079_v40 = vrot.slane %v3186_v39, 6 }
 0xaac   :  { %1080 = vrot.lane.b32.xlu1 %v1079_v40, %s2917_s19 }
 0xb18   :  { %v1075_v41 = vpop.permute.xlu0 %1074 }
 0xb19   :  { %1078 = vst.msk [vmem:[#allocation4 + $0x8] sm:$0x3] %vm396_vm3, %v1075_v41  ;;  %2556 = vmatmul.mubr.msk.f32.vlgmr.msra.gmra.mxu0 %vm193_vm2, %v1075_v41 }
 0xb1a   :  { %2570 = vmatpush3.msra.mxu0 %v2977_v8  ;;  %2577 = vmatprep.mubr.msk.f32.mxu0 %vm2915_vm0, %v2914_v0 }
 0xb1b   :  { %2571 = vmatprep.subr.mxu0 %v2914_v0 }
 0xb1c   :  { %2572 = vmatpush3.msra.mxu0 %v2984_v10 }
 0xb1d   :  { %2573 = vmatprep.subr.mxu0 %v2914_v0 }
 0xb1e   :  { %2574 = vmatpush3.msra.mxu0 %v2994_v13  ;;  %v1081_v42 = vpop.permute.xlu1 %1080 }
 0xb1f   :  { %2575 = vmatprep.subr.mxu0 %v2914_v0  ;;  %2545 = vmatmul.mubr.msk.f32.vlgmr.msra.gmra.mxu1 %vm193_vm2, %v1081_v42 }
 0xb20   :  { %2576 = vmatpush3.msra.mxu0 %v3000_v14  ;;  %2559 = vmatpush3.msra.mxu1 %v2971_v5 }
 0xb21   :  { %2566 = vmatprep.mubr.msk.f32.mxu1 %vm2915_vm0, %v2914_v0  ;;  %2560 = vmatprep.subr.mxu1 %v2914_v0 }
 0xb22   :  { %2591 = vmatprep.subr.mxu0 %v2914_v0  ;;  %2561 = vmatpush3.msra.mxu1 %v2974_v7 }
 0xb23   :  { %2562 = vmatprep.subr.mxu1 %v2914_v0 }
 0xb24   :  { %2563 = vmatpush3.msra.mxu1 %v2982_v9 }
 0xb25   :  { %2564 = vmatprep.subr.mxu1 %v2914_v0 }
 0xb26   :  { %2565 = vmatpush3.msra.mxu1 %v2990_v12 }
 0xb27   :  { %2580 = vmatprep.subr.mxu1 %v2914_v0 }
 0xbd9   :  { %v1222_v43 = vpop.f32.mrf.mxu0 }
 0xbda   :  { %v1230_v45 = vrot.slane %v1222_v43, 2 }
 0xbdb   :  { %v2557_v48 = vpop.f32.mrf.mxu0 }
 0xbdc   :  { %v1232_v49 = vadd.f32 %v1230_v45, %v1228_v46 }
 0xbde   :  { %2702 = vtanh.f32 %v1232_v49  ;;  %v2355_v58 = vmul.f32 -1.442695, %v1232_v49 }
 0xbdf   :  { %v1150_v50 = vpop.f32.mrf.mxu1 }
 0xbe0   :  { %v1227_v53 = vadd.f32 %v1226_v51, %v1150_v50 }
 0xbe1   :  { %v2546_v54 = vpop.f32.mrf.mxu1 }
 0xbe2   :  { %2704 = vtanh.f32 %v1227_v53  ;;  %v2354_v59 = vmul.f32 -1.442695, %v1227_v53 }
 0xbe3   :  { %2706 = vpow2.f32 %v2355_v58 }
 0xbe4   :  { %2708 = vpow2.f32 %v2354_v59 }
 0xbeb   :  { %v2703_v56 = vpop.eup %2702 }
 0xbec   :  { %1272 = vrot.lane.b32.xlu0 %v2703_v56, %s2916_s2 }
 0xbef   :  { %v2705_v57 = vpop.eup %2704 }
 0xbf0   :  { %1245 = vrot.lane.b32.xlu1 %v2705_v57, %s2916_s2  ;;  %v2707_v60 = vpop.eup %2706 }
 0xbf1   :  { %v1263_v61 = vadd.f32 1.0, %v2707_v60  ;;  %v2709_v63 = vpop.eup %2708 }
 0xbf2   :  { %v1236_v1 = vadd.f32 1.0, %v2709_v63 }
 0xbf3   :  { %2710 = vrcp.f32 %v1263_v61 }
 0xbf4   :  { %2712 = vrcp.f32 %v1236_v1 }
 0xc00   :  { %v2711_v2 = vpop.eup %2710 }
 0xc01   :  { %v2713_v6 = vpop.eup %2712  ;;  %v1270_v21 = vmul.f32 %v2711_v2, %v1268_v20 }
 0xc02   :  { %v1243_v25 = vmul.f32 %v2713_v6, %v1241_v24 }
 0xc5e   :  { %v1273_v3 = vpop.permute.xlu0 %1272 }
 0xc5f   :  { %v1275_v4 = vmul.f32 %v2711_v2, %v1273_v3 }
 0xc61   :  { %1277 = vrot.lane.b32.xlu0 %v1275_v4, %s2917_s19 }
 0xc62   :  { %v1246_v11 = vpop.permute.xlu1 %1245 }
 0xc63   :  { %v1248_v18 = vmul.f32 %v2713_v6, %v1246_v11 }
 0xc65   :  { %1250 = vrot.lane.b32.xlu1 %v1248_v18, %s2917_s19 }
 0xcd3   :  { %v1278_v22 = vpop.permute.xlu0 %1277 }
 0xcd4   :  { %v3218_v23 = vadd.f32 %v1278_v22, %v1270_v21 }
 0xcd6   :  { %2714 = vtanh.f32 %v3218_v23  ;;  %v1491_v60 = vrot.slane %v3218_v23, 2 }
 0xcd7   :  { %v1251_v26 = vpop.permute.xlu1 %1250 }
 0xcd8   :  { %v3222_v27 = vadd.f32 %v1251_v26, %v1243_v25 }
 0xcda   :  { %2716 = vtanh.f32 %v3222_v27  ;;  %v1464_v63 = vrot.slane %v3222_v27, 6  ;;  %v2770_v27 = vld [vmem:[#allocation11 + $0x18] sm:$0xff] }
 0xce3   :  { %v2715_v28 = vpop.eup %2714 }
 0xce4   :  { %1283 = vrot.lane.b32.xlu0 %v2715_v28, %s2916_s2 }
 0xce7   :  { %v2717_v30 = vpop.eup %2716 }
 0xce8   :  { %1256 = vrot.lane.b32.xlu1 %v2717_v30, %s2916_s2  ;;  %v2771_v30 = vld [vmem:[#allocation11 + $0x10] sm:$0xff] }
 0xd56   :  { %v1284_v29 = vpop.permute.xlu0 %1283 }
 0xd57   :  { %v3227_v31 = vmul.f32 %v2711_v2, %v1284_v29  ;;  %v2772_v29 = vld [vmem:[#allocation10 + $0x18] sm:$0xff] }
 0xd59   :  { %v1371_v32 = vrot.slane %v3227_v31, 6 }
 0xd5a   :  { %v1257_v33 = vpop.permute.xlu1 %1256 }
 0xd5b   :  { %1372 = vrot.lane.b32.xlu0 %v1371_v32, %s2917_s19  ;;  %v1259_v34 = vmul.f32 %v2713_v6, %v1257_v33  ;;  %v2773_v32 = vld [vmem:[#allocation10 + $0x10] sm:$0xff]  ;;  %v2774_v33 = vld [vmem:[#allocation10 + $0x8] sm:$0xff] }
 0xd5d   :  { %1288 = vrot.lane.b32.xlu1 %v1259_v34, %s2917_s19  ;;  %v2775_v34 = vld [vmem:[#allocation10] sm:$0xff] }
 0xdcd   :  { %v1373_v35 = vpop.permute.xlu0 %1372 }
 0xdce   :  { %2578 = vmatmul.mubr.msk.f32.vlgmr.msra.gmra.mxu0 %vm193_vm2, %v1373_v35 }
 0xdcf   :  { %2592 = vmatpush3.msra.mxu0 %v2977_v8  ;;  %2599 = vmatprep.mubr.msk.f32.mxu0 %vm2915_vm0, %v2914_v0  ;;  %v1289_v36 = vpop.permute.xlu1 %1288  ;;  %v1451_v8 = vld [vmem:[#allocation2] sm:$0x30] }
 0xdd0   :  { %2593 = vmatprep.subr.mxu0 %v2914_v0  ;;  %1292 = vst.msk [vmem:[#allocation3 + $0x8] sm:$0x3] %vm396_vm3, %v1289_v36  ;;  %2567 = vmatmul.mubr.msk.f32.vlgmr.msra.gmra.mxu1 %vm193_vm2, %v1289_v36 }
 0xdd1   :  { %2594 = vmatpush3.msra.mxu0 %v2984_v10  ;;  %2581 = vmatpush3.msra.mxu1 %v2971_v5 }
 0xdd2   :  { %2595 = vmatprep.subr.mxu0 %v2914_v0  ;;  %2582 = vmatprep.subr.mxu1 %v2914_v0 }
 0xdd3   :  { %2596 = vmatpush3.msra.mxu0 %v2994_v13  ;;  %2583 = vmatpush3.msra.mxu1 %v2974_v7 }
 0xdd4   :  { %2597 = vmatprep.subr.mxu0 %v2914_v0  ;;  %2584 = vmatprep.subr.mxu1 %v2914_v0 }
 0xdd5   :  { %2598 = vmatpush3.msra.mxu0 %v3000_v14  ;;  %2585 = vmatpush3.msra.mxu1 %v2982_v9  ;;  %v1446_v9 = vld [vmem:[#allocation2 + $0x18] sm:$0xc] }
 0xdd6   :  { %2588 = vmatprep.mubr.msk.f32.mxu1 %vm2915_vm0, %v2914_v0  ;;  %2586 = vmatprep.subr.mxu1 %v2914_v0 }
 0xdd7   :  { %2613 = vmatprep.subr.mxu0 %v2914_v0  ;;  %2587 = vmatpush3.msra.mxu1 %v2990_v12 }
 0xdd8   :  { %2602 = vmatprep.subr.mxu1 %v2914_v0 }
 0xe8e   :  { %v1442_v5 = vpop.f32.mrf.mxu0 }
 0xe8f   :  { %v1453_v7 = vrot.slane %v1442_v5, 4 }
 0xe90   :  { %v2579_v10 = vpop.f32.mrf.mxu0  ;;  %v1367_v38 = vpop.f32.mrf.mxu1 }
 0xe91   :  { %v1455_v37 = vadd.f32 %v1453_v7, %v1451_v8  ;;  %v1448_v40 = vrot.slane %v1367_v38, 6 }
 0xe92   :  { %v2568_v41 = vpop.f32.mrf.mxu1 }
 0xe93   :  { %2718 = vtanh.f32 %v1455_v37  ;;  %v1450_v42 = vadd.f32 %v1448_v40, %v1446_v9  ;;  %v2359_v12 = vmul.f32 -1.442695, %v1455_v37  ;;  %v1672_v37 = vld [vmem:[#allocation2 + $0x18] sm:$0x30] }
 0xe95   :  { %2720 = vtanh.f32 %v1450_v42  ;;  %v2358_v46 = vmul.f32 -1.442695, %v1450_v42 }
 0xe96   :  { %2722 = vpow2.f32 %v2359_v12 }
 0xe97   :  { %2724 = vpow2.f32 %v2358_v46 }
 0xea0   :  { %v2719_v43 = vpop.eup %2718 }
 0xea1   :  { %1495 = vrot.lane.b32.xlu0 %v2719_v43, %s2916_s2 }
 0xea2   :  { %v2721_v45 = vpop.eup %2720 }
 0xea3   :  { %1468 = vrot.lane.b32.xlu1 %v2721_v45, %s2916_s2  ;;  %v2723_v48 = vpop.eup %2722 }
 0xea4   :  { %v2725_v49 = vpop.eup %2724  ;;  %v1486_v50 = vadd.f32 1.0, %v2723_v48 }
 0xea5   :  { %v1459_v51 = vadd.f32 1.0, %v2725_v49 }
 0xea6   :  { %2726 = vrcp.f32 %v1486_v50 }
 0xea7   :  { %2728 = vrcp.f32 %v1459_v51 }
 0xeb3   :  { %v2727_v53 = vpop.eup %2726 }
 0xeb4   :  { %v2729_v57 = vpop.eup %2728  ;;  %v1493_v61 = vmul.f32 %v2727_v53, %v1491_v60 }
 0xeb5   :  { %v1466_v3 = vmul.f32 %v2729_v57, %v1464_v63 }
 0xf13   :  { %v1496_v54 = vpop.permute.xlu0 %1495 }
 0xf14   :  { %v1498_v56 = vmul.f32 %v2727_v53, %v1496_v54 }
 0xf15   :  { %v1469_v58 = vpop.permute.xlu1 %1468 }
 0xf16   :  { %1500 = vrot.lane.b32.xlu0 %v1498_v56, %s2917_s19  ;;  %v1471_v59 = vmul.f32 %v2729_v57, %v1469_v58 }
 0xf18   :  { %1473 = vrot.lane.b32.xlu1 %v1471_v59, %s2917_s19 }
 0xf88   :  { %v1501_v1 = vpop.permute.xlu0 %1500 }
 0xf89   :  { %v3261_v2 = vadd.f32 %v1501_v1, %v1493_v61 }
 0xf8a   :  { %v1474_v4 = vpop.permute.xlu1 %1473 }
 0xf8b   :  { %2730 = vtanh.f32 %v3261_v2  ;;  %v3264_v6 = vadd.f32 %v1474_v4, %v1466_v3  ;;  %v1717_v54 = vrot.slane %v3261_v2, 2 }
 0xf8d   :  { %2732 = vtanh.f32 %v3264_v6 }
 0xf98   :  { %v2731_v11 = vpop.eup %2730 }
 0xf99   :  { %1506 = vrot.lane.b32.xlu0 %v2731_v11, %s2916_s2 }
 0xf9a   :  { %v2733_v18 = vpop.eup %2732 }
 0xf9b   :  { %1479 = vrot.lane.b32.xlu1 %v2733_v18, %s2916_s2 }
0x100b   :  { %v1507_v20 = vpop.permute.xlu0 %1506 }
0x100c   :  { %v3269_v21 = vmul.f32 %v2727_v53, %v1507_v20 }
0x100d   :  { %v1480_v23 = vpop.permute.xlu1 %1479 }
0x100e   :  { %v1597_v22 = vrot.slane %v3269_v21, 4  ;;  %v3272_v24 = vmul.f32 %v2729_v57, %v1480_v23  ;;  %v1690_v57 = vrot.slane %v3264_v6, 6 }
0x1010   :  { %1598 = vrot.lane.b32.xlu0 %v1597_v22, %s2917_s19  ;;  %v1522_v25 = vrot.slane %v3272_v24, 2 }
0x1012   :  { %1523 = vrot.lane.b32.xlu1 %v1522_v25, %s2917_s19 }
0x1082   :  { %v1599_v26 = vpop.permute.xlu0 %1598 }
0x1083   :  { %2600 = vmatmul.mubr.msk.f32.vlgmr.msra.gmra.mxu0 %vm193_vm2, %v1599_v26  ;;  %v1903_v26 = vld [vmem:[#allocation2] sm:$0x3] }
0x1084   :  { %2614 = vmatpush3.msra.mxu0 %v2770_v27  ;;  %2621 = vmatprep.mubr.msk.f32.mxu0 %vm2915_vm0, %v2914_v0  ;;  %v1524_v28 = vpop.permute.xlu1 %1523 }
0x1085   :  { %2615 = vmatprep.subr.mxu0 %v2914_v0  ;;  %2589 = vmatmul.mubr.msk.f32.vlgmr.msra.gmra.mxu1 %vm193_vm2, %v1524_v28 }
0x1086   :  { %2616 = vmatpush3.msra.mxu0 %v2771_v30  ;;  %2603 = vmatpush3.msra.mxu1 %v2772_v29 }
0x1087   :  { %2617 = vmatprep.subr.mxu0 %v2914_v0  ;;  %2604 = vmatprep.subr.mxu1 %v2914_v0 }
0x1088   :  { %2618 = vmatpush3.msra.mxu0 %v2994_v13  ;;  %2605 = vmatpush3.msra.mxu1 %v2773_v32  ;;  %v1677_v13 = vld [vmem:[#allocation2] sm:$0xc]  ;;  %v1898_v32 = vld [vmem:[#allocation2 + $0x18] sm:$0xc0] }
0x1089   :  { %2619 = vmatprep.subr.mxu0 %v2914_v0  ;;  %2606 = vmatprep.subr.mxu1 %v2914_v0 }
0x108a   :  { %2620 = vmatpush3.msra.mxu0 %v3000_v14  ;;  %2607 = vmatpush3.msra.mxu1 %v2774_v33 }
0x108b   :  { %2610 = vmatprep.mubr.msk.f32.mxu1 %vm2915_vm0, %v2914_v0  ;;  %2608 = vmatprep.subr.mxu1 %v2914_v0 }
0x108c   :  { %2609 = vmatpush3.msra.mxu1 %v2775_v34 }
0x1143   :  { %v1668_v35 = vpop.f32.mrf.mxu0 }
0x1144   :  { %v1679_v36 = vrot.slane %v1668_v35, 6 }
0x1145   :  { %v2601_v5 = vpop.f32.mrf.mxu0  ;;  %v1593_v8 = vpop.f32.mrf.mxu1 }
0x1146   :  { %v1681_v7 = vadd.f32 %v1679_v36, %v1677_v13  ;;  %v1674_v10 = vrot.slane %v1593_v8, 4 }
0x1147   :  { %v2590_v38 = vpop.f32.mrf.mxu1 }
0x1148   :  { %2734 = vtanh.f32 %v1681_v7  ;;  %v1676_v14 = vadd.f32 %v1674_v10, %v1672_v37  ;;  %v2363_v0 = vmul.f32 -1.442695, %v1681_v7 }
0x114a   :  { %2736 = vtanh.f32 %v1676_v14  ;;  %v2362_v41 = vmul.f32 -1.442695, %v1676_v14 }
0x114b   :  { %2738 = vpow2.f32 %v2363_v0 }
0x114c   :  { %2740 = vpow2.f32 %v2362_v41 }
0x1155   :  { %v2735_v40 = vpop.eup %2734 }
0x1156   :  { %1721 = vrot.lane.b32.xlu0 %v2735_v40, %s2916_s2 }
0x1157   :  { %v2737_v9 = vpop.eup %2736 }
0x1158   :  { %1694 = vrot.lane.b32.xlu1 %v2737_v9, %s2916_s2  ;;  %v2739_v42 = vpop.eup %2738 }
0x1159   :  { %v2741_v43 = vpop.eup %2740  ;;  %v1712_v45 = vadd.f32 1.0, %v2739_v42 }
0x115a   :  { %v1685_v12 = vadd.f32 1.0, %v2741_v43 }
0x115b   :  { %2742 = vrcp.f32 %v1712_v45 }
0x115c   :  { %2744 = vrcp.f32 %v1685_v12 }
0x1168   :  { %v2743_v46 = vpop.eup %2742 }
0x1169   :  { %v2745_v50 = vpop.eup %2744  ;;  %v1719_v56 = vmul.f32 %v2743_v46, %v1717_v54 }
0x116a   :  { %v1692_v60 = vmul.f32 %v2745_v50, %v1690_v57 }
0x11c8   :  { %v1722_v48 = vpop.permute.xlu0 %1721 }
0x11c9   :  { %v1724_v49 = vmul.f32 %v2743_v46, %v1722_v48 }
0x11ca   :  { %v1695_v51 = vpop.permute.xlu1 %1694 }
0x11cb   :  { %1726 = vrot.lane.b32.xlu0 %v1724_v49, %s2917_s19  ;;  %v1697_v53 = vmul.f32 %v2745_v50, %v1695_v51 }
0x11cd   :  { %1699 = vrot.lane.b32.xlu1 %v1697_v53, %s2917_s19 }
0x123d   :  { %v1727_v58 = vpop.permute.xlu0 %1726 }
0x123e   :  { %v1729_v59 = vadd.f32 %v1727_v58, %v1719_v56 }
0x123f   :  { %v1700_v61 = vpop.permute.xlu1 %1699 }
0x1240   :  { %2746 = vtanh.f32 %v1729_v59  ;;  %v1702_v63 = vadd.f32 %v1700_v61, %v1692_v60  ;;  %v1940_v42 = vrot.slane %v1729_v59, 2 }
0x1242   :  { %2748 = vtanh.f32 %v1702_v63 }
0x124d   :  { %v2747_v1 = vpop.eup %2746 }
0x124e   :  { %1732 = vrot.lane.b32.xlu0 %v2747_v1, %s2916_s2 }
0x124f   :  { %v2749_v3 = vpop.eup %2748 }
0x1250   :  { %1705 = vrot.lane.b32.xlu1 %v2749_v3, %s2916_s2 }
0x12c0   :  { %v1733_v4 = vpop.permute.xlu0 %1732 }
0x12c1   :  { %v1735_v11 = vmul.f32 %v2743_v46, %v1733_v4  ;;  %v1913_v46 = vrot.slane %v1702_v63, 6  ;;  %v3353_v4 = vld [vmem:[#allocation3] sm:$0x3] }
0x12c2   :  { %v1706_v2 = vpop.permute.xlu1 %1705 }
0x12c3   :  { %v1823_v18 = vrot.slane %v1735_v11, 2  ;;  %v3299_v20 = vmul.f32 %v2745_v50, %v1706_v2 }
0x12c5   :  { %1824 = vrot.lane.b32.xlu0 %v1823_v18, %s2917_s19  ;;  %v1748_v6 = vrot.slane %v3299_v20, 4 }
0x12c7   :  { %1749 = vrot.lane.b32.xlu1 %v1748_v6, %s2917_s19 }
0x1337   :  { %v1825_v22 = vpop.permute.xlu0 %1824 }
0x1338   :  { %2622 = vmatmul.mubr.msk.f32.vlgmr.msra.gmra.mxu0 %vm193_vm2, %v1825_v22 }
0x1339   :  { %v1750_v23 = vpop.permute.xlu1 %1749 }
0x133a   :  { %2611 = vmatmul.mubr.msk.f32.vlgmr.msra.gmra.mxu1 %vm193_vm2, %v1750_v23 }
0x13f8   :  { %v1894_v25 = vpop.f32.mrf.mxu0 }
0x13f9   :  { %v1904_v27 = vadd.f32 %v1903_v26, %v1894_v25 }
0x13fa   :  { %v2623_v28 = vpop.f32.mrf.mxu0  ;;  %v1819_v30 = vpop.f32.mrf.mxu1 }
0x13fb   :  { %2750 = vtanh.f32 %v1904_v27  ;;  %v1900_v29 = vrot.slane %v1819_v30, 2  ;;  %v2367_v13 = vmul.f32 -1.442695, %v1904_v27 }
0x13fc   :  { %v2612_v33 = vpop.f32.mrf.mxu1 }
0x13fd   :  { %v1902_v34 = vadd.f32 %v1900_v29, %v1898_v32 }
0x13ff   :  { %2752 = vtanh.f32 %v1902_v34  ;;  %v2366_v5 = vmul.f32 -1.442695, %v1902_v34  ;;  %v3376_v34 = vld [vmem:[#allocation3 + $0x8] sm:$0x3] }
0x1400   :  { %2754 = vpow2.f32 %v2367_v13 }
0x1401   :  { %2756 = vpow2.f32 %v2366_v5 }
0x1408   :  { %v2751_v35 = vpop.eup %2750 }
0x1409   :  { %1944 = vrot.lane.b32.xlu0 %v2751_v35, %s2916_s2 }
0x140c   :  { %v2753_v36 = vpop.eup %2752 }
0x140d   :  { %1917 = vrot.lane.b32.xlu1 %v2753_v36, %s2916_s2  ;;  %v2755_v7 = vpop.eup %2754 }
0x140e   :  { %v1935_v8 = vadd.f32 1.0, %v2755_v7  ;;  %v2757_v10 = vpop.eup %2756 }
0x140f   :  { %v1908_v37 = vadd.f32 1.0, %v2757_v10  ;;  %v3387_v10 = vld [vmem:[#allocation4 + $0x8] sm:$0x3] }
0x1410   :  { %2758 = vrcp.f32 %v1935_v8 }
0x1411   :  { %2760 = vrcp.f32 %v1908_v37 }
0x141d   :  { %v2759_v38 = vpop.eup %2758 }
0x141e   :  { %v2761_v9 = vpop.eup %2760  ;;  %v1942_v43 = vmul.f32 %v2759_v38, %v1940_v42 }
0x141f   :  { %v1915_v48 = vmul.f32 %v2761_v9, %v1913_v46 }
0x147b   :  { %v1945_v14 = vpop.permute.xlu0 %1944 }
0x147c   :  { %v1947_v40 = vmul.f32 %v2759_v38, %v1945_v14 }
0x147e   :  { %1949 = vrot.lane.b32.xlu0 %v1947_v40, %s2917_s19 }
0x147f   :  { %v1918_v0 = vpop.permute.xlu1 %1917 }
0x1480   :  { %v1920_v41 = vmul.f32 %v2761_v9, %v1918_v0 }
0x1482   :  { %1922 = vrot.lane.b32.xlu1 %v1920_v41, %s2917_s19 }
0x14f0   :  { %v1950_v45 = vpop.permute.xlu0 %1949 }
0x14f1   :  { %v1952_v12 = vadd.f32 %v1950_v45, %v1942_v43 }
0x14f3   :  { %2762 = vtanh.f32 %v1952_v12 }
0x14f4   :  { %v1923_v49 = vpop.permute.xlu1 %1922 }
0x14f5   :  { %v1925_v50 = vadd.f32 %v1923_v49, %v1915_v48 }
0x14f7   :  { %2764 = vtanh.f32 %v1925_v50 }
0x1500   :  { %v2763_v51 = vpop.eup %2762 }
0x1501   :  { %1955 = vrot.lane.b32.xlu0 %v2763_v51, %s2916_s2 }
0x1504   :  { %v2765_v53 = vpop.eup %2764 }
0x1505   :  { %617 = vrot.lane.b32.xlu0 %v3100_v55, %s2917_s19  ;;  %1928 = vrot.lane.b32.xlu1 %v2765_v53, %s2916_s2 }
0x1509   :  { %1517 = vrot.lane.b32.xlu0 %v3269_v21, %s2917_s19  ;;  %1743 = vrot.lane.b32.xlu1 %v1735_v11, %s2917_s19 }
0x150d   :  { %1294 = vrot.lane.b32.xlu0 %v3227_v31, %s2917_s19  ;;  %845 = vrot.lane.b32.xlu1 %v3144_v47, %s2917_s19 }
0x1511   :  { %1511 = vrot.lane.b32.xlu0 %v3272_v24, %s2917_s19  ;;  %1068 = vrot.lane.b32.xlu1 %v3186_v39, %s2917_s19 }
0x1515   :  { %851 = vrot.lane.b32.xlu1 %v3141_v44, %s2917_s19 }
0x1519   :  { %624 = vrot.lane.b32.xlu1 %v3097_v52, %s2917_s19 }
0x151d   :  { %399 = vrot.lane.b32.xlu1 %v3055_v62, %s2917_s19 }
0x1573   :  { %v1956_v55 = vpop.permute.xlu0 %1955 }
0x1574   :  { %v1958_v31 = vmul.f32 %v2759_v38, %v1956_v55 }
0x1576   :  { %1966 = vrot.lane.b32.xlu0 %v1958_v31, %s2917_s19 }
0x1577   :  { %v618_v47 = vpop.permute.xlu0 %617  ;;  %v1929_v21 = vpop.permute.xlu1 %1928 }
0x1578   :  { %622 = vst.msk [vmem:[#allocation3] sm:$0xc] %vm621_vm4, %v618_v47  ;;  %v1931_v24 = vmul.f32 %v2761_v9, %v1929_v21 }
0x157a   :  { %1737 = vrot.lane.b32.xlu0 %v3299_v20, %s2917_s19  ;;  %v1986_v44 = vrot.slane %v1931_v24, 6 }
0x157b   :  { %v1518_v39 = vpop.permute.xlu0 %1517  ;;  %v1744_v52 = vpop.permute.xlu1 %1743 }
0x157c   :  { %1521 = vst.msk [vmem:[#allocation4] sm:$0x30] %vm628_vm5, %v1518_v39  ;;  %1987 = vrot.lane.b32.xlu1 %v1986_v44, %s2917_s19 }
0x157d   :  { %1747 = vst.msk [vmem:[#allocation4] sm:$0xc] %vm621_vm4, %v1744_v52 }
0x157e   :  { %1960 = vrot.lane.b32.xlu0 %v1931_v24, %s2917_s19 }
0x157f   :  { %v1295_v62 = vpop.permute.xlu0 %1294  ;;  %v846_v54 = vpop.permute.xlu1 %845  ;;  %v3351_v3 = vld [vmem:[#allocation3 + $0x2] sm:$0x3] }
0x1580   :  { %1298 = vst.msk [vmem:[#allocation4] sm:$0xc0] %vm403_vm6, %v1295_v62 }
0x1581   :  { %849 = vst.msk [vmem:[#allocation3] sm:$0x30] %vm628_vm5, %v846_v54 }
0x1583   :  { %v1512_v56 = vpop.permute.xlu0 %1511  ;;  %v1069_v57 = vpop.permute.xlu1 %1068  ;;  %v3369_v28 = vld [vmem:[#allocation4 + $0x4] sm:$0x3] }
0x1584   :  { %1515 = vst.msk [vmem:[#allocation3 + $0x8] sm:$0xc] %vm621_vm4, %v1512_v56  ;;  %v3360_v6 = vld [vmem:[#allocation4 + $0x2] sm:$0x3] }
0x1585   :  { %1072 = vst.msk [vmem:[#allocation3] sm:$0xc0] %vm403_vm6, %v1069_v57 }
0x1587   :  { %v852_v58 = vpop.permute.xlu1 %851  ;;  %v3378_v35 = vld [vmem:[#allocation4 + $0x6] sm:$0x3] }
0x1588   :  { %855 = vst.msk [vmem:[#allocation4 + $0x8] sm:$0xc] %vm621_vm4, %v852_v58  ;;  %v3358_v20 = vld [vmem:[#allocation3 + $0x4] sm:$0x3] }
0x158b   :  { %v625_v59 = vpop.permute.xlu1 %624  ;;  %v3385_v8 = vld [vmem:[#allocation3 + $0xa] sm:$0x3] }
0x158c   :  { %629 = vst.msk [vmem:[#allocation4 + $0x8] sm:$0x30] %vm628_vm5, %v625_v59  ;;  %v3367_v27 = vld [vmem:[#allocation3 + $0x6] sm:$0x3] }
0x158f   :  { %v400_v60 = vpop.permute.xlu1 %399  ;;  %v3396_v0 = vld [vmem:[#allocation4 + $0xa] sm:$0x3] }
0x1590   :  { %404 = vst.msk [vmem:[#allocation4 + $0x8] sm:$0xc0] %vm403_vm6, %v400_v60 }
0x1593   :  { %v3412_v53 = vld [vmem:[#allocation4 + $0xc] sm:$0x3] }
0x1597   :  { %v3418_v21 = vld [vmem:[#allocation4 + $0xe] sm:$0x3] }
0x15e8   :  { %v3346_v61 = vpop.permute.xlu0 %1966 }
0x15e9   :  { %1969 = vst.msk [vmem:[#allocation4] sm:$0x3] %vm396_vm3, %v3346_v61  ;;  %v2023_v26 = vmul.f32 %v3360_v6, %v3346_v61  ;;  %v2024_v33 = vmul.f32 %v3369_v28, %v3346_v61  ;;  %v2025_v7 = vmul.f32 %v3378_v35, %v3346_v61  ;;  %v2026_v40 = vmul.f32 %v3387_v10, %v3346_v61 }
0x15ea   :  { %v2027_v45 = vmul.f32 %v3396_v0, %v3346_v61  ;;  %v2028_v47 = vmul.f32 %v3412_v53, %v3346_v61  ;;  %v2029_v44 = vmul.f32 %v3418_v21, %v3346_v61 }
0x15eb   :  { %v2033_v29 = vsel %vm396_vm3, %v2023_v26, 0.0  ;;  %v2036_v13 = vsel %vm396_vm3, %v2024_v33, 0.0  ;;  %v2039_v38 = vsel %vm396_vm3, %v2025_v7, 0.0  ;;  %v2042_v42 = vsel %vm396_vm3, %v2026_v40, 0.0 }
0x15ec   :  { %v1738_v63 = vpop.permute.xlu0 %1737  ;;  %v2045_v49 = vsel %vm396_vm3, %v2027_v45, 0.0  ;;  %v2048_v24 = vsel %vm396_vm3, %v2028_v47, 0.0  ;;  %v2051_v39 = vsel %vm396_vm3, %v2029_v44, 0.0 }
0x15ed   :  { %1741 = vst.msk [vmem:[#allocation3 + $0x8] sm:$0x30] %vm628_vm5, %v1738_v63 }
0x15ee   :  { %v1988_v1 = vpop.permute.xlu1 %1987 }
0x15ef   :  { %v1991_v18 = vmul.f32 %v1988_v1, %v3351_v3  ;;  %v1990_v2 = vmul.f32 %v1988_v1, %v3353_v4  ;;  %v1992_v25 = vmul.f32 %v1988_v1, %v3358_v20  ;;  %v1993_v32 = vmul.f32 %v1988_v1, %v3367_v27 }
0x15f0   :  { %v1961_v11 = vpop.permute.xlu0 %1960  ;;  %v1994_v5 = vmul.f32 %v1988_v1, %v3376_v34  ;;  %v1995_v14 = vmul.f32 %v1988_v1, %v3385_v8  ;;  %v3405_v46 = vld [vmem:[#allocation4] sm:$0x3] }
0x15f1   :  { %1964 = vst.msk [vmem:[#allocation3 + $0x8] sm:$0xc0] %vm403_vm6, %v1961_v11  ;;  %v2001_v22 = vsel %vm396_vm3, %v1991_v18, 0.0  ;;  %v1998_v23 = vsel %vm396_vm3, %v1990_v2, 0.0  ;;  %v2004_v30 = vsel %vm396_vm3, %v1992_v25, 0.0  ;;  %v2007_v36 = vsel %vm396_vm3, %v1993_v32, 0.0 }
0x15f2   :  { %2002 = vadd.xlane.f32.xlu1 %v2001_v22  ;;  %1999 = vadd.xlane.f32.xlu0 %v1998_v23  ;;  %v2010_v37 = vsel %vm396_vm3, %v1994_v5, 0.0  ;;  %v2013_v41 = vsel %vm396_vm3, %v1995_v14, 0.0  ;;  %v2022_v51 = vmul.f32 %v3405_v46, %v3346_v61 }
0x15f4   :  { %v3394_v9 = vld [vmem:[#allocation3 + $0xc] sm:$0x3]  ;;  %v2030_v31 = vsel %vm396_vm3, %v2022_v51, 0.0 }
0x15f5   :  { %v1996_v43 = vmul.f32 %v1988_v1, %v3394_v9 }
0x15f6   :  { %2005 = vadd.xlane.f32.xlu1 %v2004_v30  ;;  %2034 = vadd.xlane.f32.xlu0 %v2033_v29 }
0x15f7   :  { %v2016_v48 = vsel %vm396_vm3, %v1996_v43, 0.0 }
0x15f8   :  { %v3403_v12 = vld [vmem:[#allocation3 + $0xe] sm:$0x3] }
0x15f9   :  { %v1997_v50 = vmul.f32 %v1988_v1, %v3403_v12  ;;  %v2071_v1 = vand.u32 127, %v87_v15 }
0x15fa   :  { %2008 = vadd.xlane.f32.xlu1 %v2007_v36  ;;  %2037 = vadd.xlane.f32.xlu0 %v2036_v13 }
0x15fb   :  { %v2019_v55 = vsel %vm396_vm3, %v1997_v50, 0.0  ;;  %v2074_v2 = vsub.s32 %v2071_v1, %v3032_v16  ;;  %v2240_v1 = vsub.s32 6, %v3032_v16 }
0x15fe   :  { %2011 = vadd.xlane.f32.xlu1 %v2010_v37  ;;  %2040 = vadd.xlane.f32.xlu0 %v2039_v38 }
0x1602   :  { %2014 = vadd.xlane.f32.xlu1 %v2013_v41  ;;  %2043 = vadd.xlane.f32.xlu0 %v2042_v42 }
0x1606   :  { %2017 = vadd.xlane.f32.xlu1 %v2016_v48  ;;  %2046 = vadd.xlane.f32.xlu0 %v2045_v49 }
0x160a   :  { %2020 = vadd.xlane.f32.xlu1 %v2019_v55  ;;  %2031 = vadd.xlane.f32.xlu0 %v2030_v31 }
0x160e   :  { %2049 = vadd.xlane.f32.xlu0 %v2048_v24 }
0x1612   :  { %2052 = vadd.xlane.f32.xlu0 %v2051_v39 }
0x167b   :  { %v2003_v52 = vpop.xlane.xlu1 %2002  ;;  %v2000_v62 = vpop.xlane.xlu0 %1999 }
0x167f   :  { %v2006_v54 = vpop.xlane.xlu1 %2005  ;;  %v2035_v56 = vpop.xlane.xlu0 %2034 }
0x1680   :  { %v2055_v61 = vadd.f32 %v2035_v56, %v2003_v52 }
0x1682   :  { %v2079_v32 = vrot.slane %v2055_v61, %v2074_v2  ;;  %v2219_v61 = vsub.s32 3, %v3032_v16 }
0x1683   :  { %v2009_v57 = vpop.xlane.xlu1 %2008  ;;  %v2038_v58 = vpop.xlane.xlu0 %2037 }
0x1684   :  { %v2056_v22 = vadd.f32 %v2038_v58, %v2006_v54 }
0x1686   :  { %v2083_v13 = vrot.slane %v2056_v22, %v2074_v2 }
0x1687   :  { %v2041_v59 = vpop.xlane.xlu0 %2040  ;;  %v2012_v60 = vpop.xlane.xlu1 %2011 }
0x1688   :  { %v2057_v25 = vadd.f32 %v2041_v59, %v2009_v57 }
0x168a   :  { %v2087_v15 = vrot.slane %v2057_v25, %v2074_v2  ;;  %v2233_v25 = vsub.s32 5, %v3032_v16 }
0x168b   :  { %v2044_v63 = vpop.xlane.xlu0 %2043  ;;  %v2015_v11 = vpop.xlane.xlu1 %2014 }
0x168c   :  { %v2058_v30 = vadd.f32 %v2044_v63, %v2012_v60 }
0x168e   :  { %v2091_v38 = vrot.slane %v2058_v30, %v2074_v2 }
0x168f   :  { %v2047_v18 = vpop.xlane.xlu0 %2046  ;;  %v2018_v29 = vpop.xlane.xlu1 %2017 }
0x1690   :  { %v2059_v33 = vadd.f32 %v2047_v18, %v2015_v11  ;;  %v2212_v11 = vsub.s32 2, %v3032_v16 }
0x1692   :  { %v2095_v40 = vrot.slane %v2059_v33, %v2074_v2 }
0x1693   :  { %v2032_v23 = vpop.xlane.xlu0 %2031  ;;  %v2021_v42 = vpop.xlane.xlu1 %2020 }
0x1694   :  { %v2054_v26 = vadd.f32 %v2032_v23, %v2000_v62  ;;  %v2226_v23 = vsub.s32 4, %v3032_v16 }
0x1696   :  { %v2075_v36 = vrot.slane %v2054_v26, %v2074_v2  ;;  %v2247_v26 = vsub.s32 7, %v3032_v16 }
0x1697   :  { %v2050_v5 = vpop.xlane.xlu0 %2049 }
0x1698   :  { %v2105_v7 = vsel %vm2104_vm7, %v2079_v32, %v2075_v36  ;;  %v2060_v37 = vadd.f32 %v2050_v5, %v2018_v29 }
0x1699   :  { %v2107_v14 = vsel %vm2106_vm8, %v2083_v13, %v2105_v7 }
0x169a   :  { %v2109_v41 = vsel %vm2108_vm9, %v2087_v15, %v2107_v14  ;;  %v2099_v43 = vrot.slane %v2060_v37, %v2074_v2 }
0x169b   :  { %v2053_v45 = vpop.xlane.xlu0 %2052  ;;  %v2111_v48 = vsel %vm2110_vm10, %v2091_v38, %v2109_v41 }
0x169c   :  { %v2061_v49 = vadd.f32 %v2053_v45, %v2021_v42  ;;  %v2113_v50 = vsel %vm2112_vm11, %v2095_v40, %v2111_v48 }
0x169d   :  { %v2115_v55 = vsel %vm2114_vm12, %v2099_v43, %v2113_v50 }
0x169e   :  { %v2103_v51 = vrot.slane %v2061_v49, %v2074_v2 }
0x16a0   :  { %v2117_v31 = vsel %vm2116_vm13, %v2103_v51, %v2115_v55 }
0x16a1   :  { %2119 = vxpose.xlu1.b32.start.end [1/1] (short) (narrow) %v2117_v31, 8 }
0x171d   :  { %v2135_v47 = vpop.trf.xlu1 }
0x171e   :  { %v2152_v24 = vsel %vm2151_vm14, %v2135_v47, -inf }
0x171f   :  { %2153 = vmax.xlane.f32.xlu0 %v2152_v24 }
0x17a8   :  { %v2154_v44 = vpop.xlane.xlu0 %2153 }
0x17a9   :  { %v2155_v39 = vsub.f32 %v2135_v47, %v2154_v44 }
0x17ab   :  { %v2156_v52 = vmul.f32 1.442695, %v2155_v39 }
0x17ad   :  { %2766 = vpow2.f32 %v2156_v52 }
0x17ba   :  { %v2767_v62 = vpop.eup %2766 }
0x17bb   :  { %v2158_v54 = vsel %vm2151_vm14, %v2767_v62, 0.0 }
0x17bc   :  { %2159 = vadd.xlane.f32.xlu0 %v2158_v54 }
0x1845   :  { %v2160_v56 = vpop.xlane.xlu0 %2159 }
0x1846   :  { %2768 = vrcp.f32 %v2160_v56 }
0x1853   :  { %v2769_v57 = vpop.eup %2768 }
0x1854   :  { %v2162_v58 = vmul.f32 %v2769_v57, %v2767_v62 }
0x1856   :  { %2164 = vxpose.xlu0.b32.start.end [1/1] (short) (narrow) %v2162_v58, 8  ;;  %2163 = vst.msk [vmem:[#allocation14] sm:$0x3] %vm2151_vm14, %v2162_v58 }
0x18d2   :  { %v2180_v59 = vpop.trf.xlu0 }
0x18d3   :  { %v2206_v60 = vrot.slane %v2180_v59, %v93_v19  ;;  %v2199_v63 = vrot.slane %v2180_v59, %v89_v17  ;;  %v2241_v18 = vrot.slane %v2180_v59, %v2240_v1  ;;  %v2213_v2 = vrot.slane %v2180_v59, %v2212_v11 }
0x18d4   :  { %v2220_v22 = vrot.slane %v2180_v59, %v2219_v61  ;;  %v2227_v19 = vrot.slane %v2180_v59, %v2226_v23  ;;  %v2234_v17 = vrot.slane %v2180_v59, %v2233_v25  ;;  %v2248_v30 = vrot.slane %v2180_v59, %v2247_v26 }
0x18d5   :  { %2208 = vbcast.lane.b32.xlu0 %v2206_v60, 256  ;;  %2201 = vbcast.lane.b32.xlu1 %v2199_v63, 256 }
0x18d9   :  { %2243 = vbcast.lane.b32.xlu0 %v2241_v18, 256  ;;  %2215 = vbcast.lane.b32.xlu1 %v2213_v2, 256 }
0x18dd   :  { %2222 = vbcast.lane.b32.xlu1 %v2220_v22, 256 }
0x18e1   :  { %2229 = vbcast.lane.b32.xlu1 %v2227_v19, 256 }
0x18e5   :  { %2236 = vbcast.lane.b32.xlu1 %v2234_v17, 256 }
0x18e9   :  { %2250 = vbcast.lane.b32.xlu1 %v2248_v30, 256 }
0x1947   :  { %v2202_v29 = vpop.permute.xlu1 %2201  ;;  %v2209_v32 = vpop.permute.xlu0 %2208 }
0x1948   :  { %v2253_v33 = vmul.f32 %v2209_v32, %v3351_v3  ;;  %v2277_v36 = vmul.f32 %v2209_v32, %v3360_v6  ;;  %v2252_v5 = vmul.f32 %v2202_v29, %v3353_v4  ;;  %v2276_v15 = vmul.f32 %v2202_v29, %v3405_v46 }
0x194a   :  { %v2261_v16 = vsel %vm396_vm3, %v2253_v33, 0.0  ;;  %v2285_v38 = vsel %vm396_vm3, %v2277_v36, 0.0  ;;  %v2260_v40 = vsel %vm396_vm3, %v2252_v5, 0.0  ;;  %v2284_v3 = vsel %vm396_vm3, %v2276_v15, 0.0 }
0x194b   :  { %v2216_v13 = vpop.permute.xlu1 %2215  ;;  %v2286_v42 = vadd.f32 %v2285_v38, %v2284_v3 }
0x194c   :  { %v2254_v7 = vmul.f32 %v2216_v13, %v3358_v20  ;;  %v2278_v37 = vmul.f32 %v2216_v13, %v3369_v28  ;;  %v2262_v20 = vadd.f32 %v2261_v16, %v2260_v40 }
0x194e   :  { %v2263_v4 = vsel %vm396_vm3, %v2254_v7, 0.0  ;;  %v2287_v46 = vsel %vm396_vm3, %v2278_v37, 0.0 }
0x194f   :  { %v2223_v14 = vpop.permute.xlu1 %2222  ;;  %v2264_v50 = vadd.f32 %v2263_v4, %v2262_v20 }
0x1950   :  { %v2255_v6 = vmul.f32 %v2223_v14, %v3367_v27  ;;  %v2279_v41 = vmul.f32 %v2223_v14, %v3378_v35  ;;  %v2244_v27 = vpop.permute.xlu0 %2243  ;;  %v2288_v35 = vadd.f32 %v2287_v46, %v2286_v42 }
0x1952   :  { %v2265_v43 = vsel %vm396_vm3, %v2255_v6, 0.0  ;;  %v2289_v45 = vsel %vm396_vm3, %v2279_v41, 0.0 }
0x1953   :  { %v2230_v28 = vpop.permute.xlu1 %2229 }
0x1954   :  { %v2256_v48 = vmul.f32 %v2230_v28, %v3376_v34  ;;  %v2280_v49 = vmul.f32 %v2230_v28, %v3387_v10 }
0x1956   :  { %v2267_v51 = vsel %vm396_vm3, %v2256_v48, 0.0  ;;  %v2291_v55 = vsel %vm396_vm3, %v2280_v49, 0.0 }
0x1957   :  { %2867 = shalt.err (!%p2864_p10)
}
0x1958   :  { %2324 = dma.vmem_to_hbm [thread:$0]  %s2322_s21, 32, %s3485_s6, [#allocation15]   ;;  %v2266_v34 = vadd.f32 %v2265_v43, %v2264_v50  ;;  %v2290_v10 = vadd.f32 %v2289_v45, %v2288_v35  ;;  %v2237_v31 = vpop.permute.xlu1 %2236  ;;  %v2258_v47 = vmul.f32 %v2244_v27, %v3394_v9  ;;  %v2282_v24 = vmul.f32 %v2244_v27, %v3412_v53 }
0x1959   :  { %v2257_v44 = vmul.f32 %v2237_v31, %v3385_v8  ;;  %v2281_v39 = vmul.f32 %v2237_v31, %v3396_v0  ;;  %s2919_s6 = smov [#allocation13]   ;;  %vm2303_vm15 = vcmask 517376  }
0x195a   :  { %v2268_v52 = vadd.f32 %v2267_v51, %v2266_v34  ;;  %v2292_v62 = vadd.f32 %v2291_v55, %v2290_v10  ;;  %v2271_v60 = vsel %vm396_vm3, %v2258_v47, 0.0  ;;  %v2295_v63 = vsel %vm396_vm3, %v2282_v24, 0.0  ;;  %s2311_s25 = sshll.u32 %s2919_s6, 4  ;;  %s2312_s25 = int_to_ptr.vmem [resolvable:$true] %s2311_s25 }
0x195b   :  { %v2269_v54 = vsel %vm396_vm3, %v2257_v44, 0.0  ;;  %v2293_v56 = vsel %vm396_vm3, %v2281_v39, 0.0  ;;  %s2876_s26 = scalar_lea.vmem %s2312_s25, 32  ;;  %p2881_p12 = scmp.lt.s32.totalorder %s2312_s25, %s2312_s25 }
0x195c   :  { %v2270_v57 = vadd.f32 %v2269_v54, %v2268_v52  ;;  %v2294_v58 = vadd.f32 %v2293_v56, %v2292_v62  ;;  %v2251_v59 = vpop.permute.xlu1 %2250  ;;  %p2877_p11 = scmp.ne.s32.totalorder %s2312_s25, %s2876_s26  ;;  %p2882_p13 = scmp.lt.s32.totalorder %s2876_s26, %s2876_s26 }
0x195d   :  { %v2259_v9 = vmul.f32 %v2251_v59, %v3403_v12  ;;  %v2283_v53 = vmul.f32 %v2251_v59, %v3418_v21 }
0x195e   :  { %v2272_v8 = vadd.f32 %v2271_v60, %v2270_v57  ;;  %v2296_v1 = vadd.f32 %v2295_v63, %v2294_v58  ;;  %p2883_p0 = por %p2882_p13, %p2881_p12 }
0x195f   :  { %v2273_v0 = vsel %vm396_vm3, %v2259_v9, 0.0  ;;  %v2297_v11 = vsel %vm396_vm3, %v2283_v53, 0.0 }
0x1960   :  { %v2274_v18 = vadd.f32 %v2273_v0, %v2272_v8  ;;  %v2298_v2 = vadd.f32 %v2297_v11, %v2296_v1  ;;  %p2884_p1 = pnand %p2883_p0, %p2877_p11 }
0x1962   :  { %2275 = vst.msk [vmem:[#allocation13] sm:$0x3] %vm396_vm3, %v2274_v18  ;;  %2300 = vrot.lane.b32.xlu0 %v2298_v2, %s2917_s19 }
0x19d4   :  { %v2301_v61 = vpop.permute.xlu0 %2300 }
0x19d5   :  { %2304 = vst.msk [vmem:[#allocation13] sm:$0x3] %vm2303_vm15, %v2301_v61 }
0x19d6   :  { %2887 = shalt.err (!%p2884_p1)
}
0x19d7   :  { %2314 = dma.vmem_to_hbm [thread:$0]  %s2312_s25, 32, %s3484_s5, [#allocation7]  }
0x19d8   :  { %2902 = dma.done.wait [#allocation7], 32  }
0x19d9   :  { %2903 = vsyncadd [#allocation7], 4294967264 }
0x19da   :  { %2904 = dma.done.wait [#allocation15], 32  }
0x19db   :  { %2905 = vsyncadd [#allocation15], 4294967264 }
0x19dc   :  { %2331 = vsyncpa [#allocation6], 1 }
0x19dd   :  { %2332 = vsyncpa [#allocation9], 1 }
0x19de   :  { %2333 = vsyncpa [#allocation12], 1 }
0x19df   :  { %2334 = vsyncpa [#allocation7], 1 }
0x19e0   :  { %2335 = vsyncpa [#allocation15], 1 }

</bundles_post_ra>
